<compile_context>
chip_gen: v6e
topology: v6e:2x2x1
jax: 0.10.0
libtpu: 0.0.40
codegen_flags: <defaults>
</compile_context>

<pallas_src>
import functools

import jax
import jax.numpy as jnp
from jax.experimental import pallas as pl
from jax.experimental.pallas import tpu as pltpu

EPS = 1e-5


# --------------------------------------------------------------------------- #
# In-kernel helpers
# --------------------------------------------------------------------------- #
def _elu(y):
    # F.elu(alpha=1); exp(min(y, 0)) keeps the dead branch finite for large y.
    return jnp.where(y > 0.0, y, jnp.exp(jnp.minimum(y, 0.0)) - 1.0)


# --------------------------------------------------------------------------- #
# Pallas kernels (channels on sublanes, pixels on lanes)
# --------------------------------------------------------------------------- #
def conv1_stats_kernel(x_ref, w_ref, b_ref, s_ref):
    """Per-tile (sum, sumsq) of the raw conv1 output  y = w @ x + b."""
    y = jnp.dot(w_ref[...], x_ref[...], preferred_element_type=jnp.float32)
    y = y + b_ref[...]
    s_ref[0, :, 0:1] = jnp.sum(y, axis=1, keepdims=True)
    s_ref[0, :, 1:2] = jnp.sum(y * y, axis=1, keepdims=True)


def conv1_apply_kernel(x_ref, w_ref, b_ref, sc_ref, sh_ref, o_ref):
    """y1 = ELU(BN1(w @ x + b)) with BN folded into per-channel scale/shift."""
    y = jnp.dot(w_ref[...], x_ref[...], preferred_element_type=jnp.float32)
    y = y + b_ref[...]
    o_ref[...] = _elu(y * sc_ref[...] + sh_ref[...]).astype(o_ref.dtype)


def _conv2_row(pr_ref, pr1_ref, w2_ref):
    """3x3 / stride-2 conv for one output row: 9 shifted-slice matmuls.

    pr_ref : (4, 1, Cm, Wo+1) parity planes (row_par*2 + col_par) @ out-row r
    pr1_ref: (2, 1, Cm, Wo+1) even-row parity planes            @ out-row r+1
    w2_ref : (3, 3, Cm, Cm)
    returns (Cm, Wo) f32 accumulator.
    """
    wo = pr_ref.shape[-1] - 1
    acc = None
    for kh in range(3):
        for kw in range(3):
            b = kw % 2            # column parity of this tap
            dw = kw // 2          # column offset inside the parity plane
            if kh < 2:            # row parity = kh, plane row = r
                sl = pr_ref[2 * kh + b, 0, :, dw:dw + wo]
            else:                 # kh == 2 -> even-row plane at row r + 1
                sl = pr1_ref[b, 0, :, dw:dw + wo]
            t = jnp.dot(w2_ref[kh, kw], sl, preferred_element_type=jnp.float32)
            acc = t if acc is None else acc + t
    return acc


def conv2_stats_kernel(pr_ref, pr1_ref, w2_ref, b2_ref, s_ref):
    y = _conv2_row(pr_ref, pr1_ref, w2_ref) + b2_ref[...]
    s_ref[0, 0, :, 0:1] = jnp.sum(y, axis=1, keepdims=True)
    s_ref[0, 0, :, 1:2] = jnp.sum(y * y, axis=1, keepdims=True)


def conv2_res_kernel(pr_ref, pr1_ref, xs_ref, w2_ref, b2_ref, sc2_ref, sh2_ref,
                     w34_ref, b34_ref, y3_ref, s3_ref, cat_ref):
    """y2 = ELU(BN2(conv2));  y3_raw = [w3|w4] @ [y2 ; x_short] + (b3 + b4);
    also emits per-tile BN3 (sum, sumsq) partials."""
    cm = w2_ref.shape[2]
    y2 = _conv2_row(pr_ref, pr1_ref, w2_ref) + b2_ref[...]
    y2 = _elu(y2 * sc2_ref[...] + sh2_ref[...])
    # conv3 + conv4 fused into a single MXU matmul over the concatenated K axis
    cat_ref[0:cm, :] = y2.astype(cat_ref.dtype)
    cat_ref[cm:, :] = xs_ref[0, 0]
    y3 = jnp.dot(w34_ref[...], cat_ref[...], preferred_element_type=jnp.float32)
    y3 = y3 + b34_ref[...]
    y3_ref[0, 0] = y3
    s3_ref[0, 0, :, 0:1] = jnp.sum(y3, axis=1, keepdims=True)
    s3_ref[0, 0, :, 1:2] = jnp.sum(y3 * y3, axis=1, keepdims=True)


def bn_elu_kernel(y_ref, sc_ref, sh_ref, o_ref):
    o_ref[0, 0] = _elu(y_ref[0, 0] * sc_ref[...] + sh_ref[...]).astype(o_ref.dtype)


# --------------------------------------------------------------------------- #
# Wrapper-side helpers
# --------------------------------------------------------------------------- #
def _pick_tile(p, target):
    """Largest multiple of 128 dividing p and <= target (else the full p)."""
    best = p
    for t in range(128, min(p, target) + 1, 128):
        if p % t == 0:
            best = t
    return best


def _bn_scale_shift(partials, count, gamma, beta):
    """Reduce per-tile (sum, sumsq) partials -> folded BN scale/shift (C, 1)."""
    c = partials.shape[-2]
    s = jnp.sum(partials.reshape(-1, c, 2), axis=0)
    mean = s[:, 0] / count
    var = jnp.maximum(s[:, 1] / count - mean * mean, 0.0)   # biased variance
    scale = gamma * jax.lax.rsqrt(var + EPS)
    shift = beta - mean * scale
    return (scale.reshape(c, 1).astype(jnp.float32),
            shift.reshape(c, 1).astype(jnp.float32))


def _col_spec(c):
    return pl.BlockSpec((c, 1), lambda i, j: (0, 0))


# --------------------------------------------------------------------------- #
# Forward
# --------------------------------------------------------------------------- #
def res_conv_forward(x_nchw, params, *, stride=2, pixel_tile=2048):
    """Pallas forward of ResConv (2-D branch).  Returns (N, 4*Cm, H/2, W/2) f32."""
    # TODO(synk): stride != 2 (and the 3-D branch) are not implemented here.
    assert stride == 2, "only the default stride=2 branch is implemented"
    n, cin, h, w = x_nchw.shape
    assert h % 2 == 0 and w % 2 == 0, "even spatial dims required"
    cm = params["w1"].shape[0]
    c4 = 4 * cm
    ho, wo = h // 2, w // 2
    p1 = n * h * w
    p2 = n * ho * wo
    f32, bf16 = jnp.float32, jnp.bfloat16

    # ---- parameters in kernel layouts (bf16 matmul operands, f32 epilogue) --
    w1 = params["w1"][:, :, 0, 0].astype(bf16)                        # (Cm, Cin)
    b1 = params["b1"].reshape(cm, 1).astype(f32)
    w2 = jnp.transpose(params["w2"], (2, 3, 0, 1)).astype(bf16)       # (3,3,Cm,Cm)
    b2 = params["b2"].reshape(cm, 1).astype(f32)
    w34 = jnp.concatenate([params["w3"][:, :, 0, 0],
                           params["w4"][:, :, 0, 0]], axis=1).astype(bf16)
    b34 = (params["b3"] + params["b4"]).reshape(c4, 1).astype(f32)

    # ---- conv1 (1x1 stride 1): channels-first, flat-pixel layout -----------
    x_cf = jnp.transpose(x_nchw, (1, 0, 2, 3)).reshape(cin, p1).astype(bf16)
    t1 = _pick_tile(p1, pixel_tile)
    nt = p1 // t1
    one_par = pltpu.CompilerParams(dimension_semantics=("parallel",))
    two_par = pltpu.CompilerParams(dimension_semantics=("parallel", "parallel"))

    s1 = pl.pallas_call(
        conv1_stats_kernel,
        grid=(nt,),
        in_specs=[
            pl.BlockSpec((cin, t1), lambda i: (0, i)),
            pl.BlockSpec((cm, cin), lambda i: (0, 0)),
            pl.BlockSpec((cm, 1), lambda i: (0, 0)),
        ],
        out_specs=pl.BlockSpec((1, cm, 2), lambda i: (i, 0, 0)),
        out_shape=jax.ShapeDtypeStruct((nt, cm, 2), f32),
        compiler_params=one_par,
    )(x_cf, w1, b1)
    sc1, sh1 = _bn_scale_shift(s1, p1, params["bn1_g"], params["bn1_b"])

    y1 = pl.pallas_call(
        conv1_apply_kernel,
        grid=(nt,),
        in_specs=[
            pl.BlockSpec((cin, t1), lambda i: (0, i)),
            pl.BlockSpec((cm, cin), lambda i: (0, 0)),
            pl.BlockSpec((cm, 1), lambda i: (0, 0)),
            pl.BlockSpec((cm, 1), lambda i: (0, 0)),
            pl.BlockSpec((cm, 1), lambda i: (0, 0)),
        ],
        out_specs=pl.BlockSpec((cm, t1), lambda i: (0, i)),
        out_shape=jax.ShapeDtypeStruct((cm, p1), bf16),
        compiler_params=one_par,
    )(x_cf, w1, b1, sc1, sh1)

    # ---- layout glue for conv2 (NO 9x im2col): parity-split padded y1 -------
    # plane (a, b)[c, n, i, j] = y1_pad[c, n, 2i + a, 2j + b]; same total bytes.
    y1_pad = jnp.pad(y1.reshape(cm, n, h, w), ((0, 0), (0, 0), (1, 1), (1, 1)))
    planes = jnp.stack([y1_pad[:, :, a::2, b::2] for a in (0, 1) for b in (0, 1)],
                       axis=0)                               # (4, Cm, N, Ho+1, Wo+1)
    planes = jnp.transpose(planes, (2, 0, 3, 1, 4))          # (N, 4, Ho+1, Cm, Wo+1)
    planes = planes.reshape(n * 4, ho + 1, cm, wo + 1)       # row n*4 + (a*2 + b)

    # strided shortcut input for conv4 (1x1, stride 2), channels-on-sublanes
    xs = jnp.transpose(x_nchw[:, :, ::2, ::2], (0, 2, 1, 3)).astype(bf16)

    wo1 = wo + 1
    plane_spec = pl.BlockSpec((4, 1, cm, wo1), lambda i, j: (i, j, 0, 0))
    halo_spec = pl.BlockSpec((2, 1, cm, wo1), lambda i, j: (2 * i, j + 1, 0, 0))
    w2_spec = pl.BlockSpec((3, 3, cm, cm), lambda i, j: (0, 0, 0, 0))

    # ---- conv2 (3x3 stride 2): BN2 statistics pass --------------------------
    s2 = pl.pallas_call(
        conv2_stats_kernel,
        grid=(n, ho),
        in_specs=[plane_spec, halo_spec, w2_spec, _col_spec(cm)],
        out_specs=pl.BlockSpec((1, 1, cm, 2), lambda i, j: (i, j, 0, 0)),
        out_shape=jax.ShapeDtypeStruct((n, ho, cm, 2), f32),
        compiler_params=two_par,
    )(planes, planes, w2, b2)
    sc2, sh2 = _bn_scale_shift(s2, p2, params["bn2_g"], params["bn2_b"])

    # ---- conv2 apply + fused conv3/conv4 + BN3 statistics --------------------
    y3_raw, s3 = pl.pallas_call(
        conv2_res_kernel,
        grid=(n, ho),
        in_specs=[
            plane_spec, halo_spec,
            pl.BlockSpec((1, 1, cin, wo), lambda i, j: (i, j, 0, 0)),
            w2_spec, _col_spec(cm), _col_spec(cm), _col_spec(cm),
            pl.BlockSpec((c4, cm + cin), lambda i, j: (0, 0)),
            _col_spec(c4),
        ],
        out_specs=[
            pl.BlockSpec((1, 1, c4, wo), lambda i, j: (i, j, 0, 0)),
            pl.BlockSpec((1, 1, c4, 2), lambda i, j: (i, j, 0, 0)),
        ],
        out_shape=(jax.ShapeDtypeStruct((n, ho, c4, wo), f32),
                   jax.ShapeDtypeStruct((n, ho, c4, 2), f32)),
        scratch_shapes=[pltpu.VMEM((cm + cin, wo), bf16)],
        compiler_params=two_par,
    )(planes, planes, xs, w2, b2, sc2, sh2, w34, b34)
    sc3, sh3 = _bn_scale_shift(s3, p2, params["bn3_g"], params["bn3_b"])

    # ---- final BN3 + ELU ------------------------------------------------------
    out = pl.pallas_call(
        bn_elu_kernel,
        grid=(n, ho),
        in_specs=[
            pl.BlockSpec((1, 1, c4, wo), lambda i, j: (i, j, 0, 0)),
            _col_spec(c4), _col_spec(c4),
        ],
        out_specs=pl.BlockSpec((1, 1, c4, wo), lambda i, j: (i, j, 0, 0)),
        out_shape=jax.ShapeDtypeStruct((n, ho, c4, wo), f32),
        compiler_params=two_par,
    )(y3_raw, sc3, sh3)

    return jnp.transpose(out, (0, 2, 1, 3))                  # (N, 4*Cm, Ho, Wo)


# --------------------------------------------------------------------------- #
# Parameter init (torch layouts) and pure-JAX references
# --------------------------------------------------------------------------- #
def init_params(key, cin, cm, ks=3):
    ks_w = jax.random.split(key, 8)

    def wgt(k, shape):
        fan_in = 1
        for d in shape[1:]:
            fan_in *= d
        return jax.random.normal(k, shape, jnp.float32) / jnp.sqrt(float(fan_in))

    def bia(k, shape):
        return 0.1 * jax.random.normal(k, shape, jnp.float32)

    return {
        "w1": wgt(ks_w[0], (cm, cin, 1, 1)),     "b1": bia(ks_w[1], (cm,)),
        "w2": wgt(ks_w[2], (cm, cm, ks, ks)),    "b2": bia(ks_w[3], (cm,)),
        "w3": wgt(ks_w[4], (4 * cm, cm, 1, 1)),  "b3": bia(ks_w[5], (4 * cm,)),
        "w4": wgt(ks_w[6], (4 * cm, cin, 1, 1)), "b4": bia(ks_w[7], (4 * cm,)),
        "bn1_g": jnp.ones((cm,), jnp.float32),     "bn1_b": jnp.zeros((cm,), jnp.float32),
        "bn2_g": jnp.ones((cm,), jnp.float32),     "bn2_b": jnp.zeros((cm,), jnp.float32),
        "bn3_g": jnp.ones((4 * cm,), jnp.float32), "bn3_b": jnp.zeros((4 * cm,), jnp.float32),
    }


def res_conv_reference(x, p, stride=2, matmul_dtype=jnp.float32):
    """Reference forward; matmul_dtype=bfloat16 mirrors the kernel's MXU inputs."""
    def conv(xx, ww, bb, s, pad):
        y = jax.lax.conv_general_dilated(
            xx.astype(matmul_dtype), ww.astype(matmul_dtype),
            window_strides=(s, s),
            padding=((pad, pad), (pad, pad)),
            dimension_numbers=("NCHW", "OIHW", "NCHW"),
            preferred_element_type=jnp.float32,
            precision=jax.lax.Precision.HIGHEST)
        return y + bb[None, :, None, None]

    def bn(y, g, b):
        mean = jnp.mean(y, axis=(0, 2, 3), keepdims=True)
        var = jnp.mean((y - mean) ** 2, axis=(0, 2, 3), keepdims=True)
        return ((y - mean) * jax.lax.rsqrt(var + EPS) * g[None, :, None, None]
                + b[None, :, None, None])

    y1 = _elu(bn(conv(x, p["w1"], p["b1"], 1, 0), p["bn1_g"], p["bn1_b"]))
    y2 = _elu(bn(conv(y1, p["w2"], p["b2"], stride, 1), p["bn2_g"], p["bn2_b"]))
    y3 = conv(y2, p["w3"], p["b3"], 1, 0)
    y4 = conv(x, p["w4"], p["b4"], stride, 0)
    return _elu(bn(y3 + y4, p["bn3_g"], p["bn3_b"]))


# --------------------------------------------------------------------------- #
if __name__ == "__main__":
    key = jax.random.PRNGKey(0)
    k_x, k_p = jax.random.split(key)

    N, CIN, H, W = 2, 4, 16, 16       # NCHW input, as in torch
    CM = 4                            # num_out_layers
    STRIDE = 2

    x = jax.random.normal(k_x, (N, CIN, H, W), jnp.float32)
    params = init_params(k_p, CIN, CM)

    # pixel_tile=128 exercises the multi-tile two-pass-BN path at toy sizes
    # (production default is 2048-pixel tiles).
    fwd = jax.jit(functools.partial(res_conv_forward, stride=STRIDE, pixel_tile=128))
    out = jax.block_until_ready(fwd(x, params))
    assert out.shape == (N, 4 * CM, H // STRIDE, W // STRIDE), out.shape

    # (1) tight check vs a reference running the same numerics (bf16 matmul
    #     operands, f32 accumulation / BN / ELU) -> validates the kernels.
    ref_m = res_conv_reference(x, params, stride=STRIDE, matmul_dtype=jnp.bfloat16)
    if not bool(jnp.allclose(out, ref_m, rtol=5e-3, atol=5e-3)):
        err = float(jnp.max(jnp.abs(out - ref_m)))
        raise AssertionError(f"mismatch vs bf16-matmul reference, max|err|={err}")

    # (2) looser check vs the full-f32 torch-equivalent forward; the gap is the
    #     bf16 matmul-operand rounding requested by the perf review.
    ref_f = res_conv_reference(x, params, stride=STRIDE, matmul_dtype=jnp.float32)
    if not bool(jnp.allclose(out, ref_f, rtol=5e-2, atol=5e-2)):
        err = float(jnp.max(jnp.abs(out - ref_f)))
        raise AssertionError(f"mismatch vs f32 reference, max|err|={err}")

    print("KERNEL_OK")
</pallas_src>

<mosaic_0001>
module attributes {stable_mosaic.version = 11 : i64} {
  func.func @conv1_stats_kernel(%arg0: i32, %arg1: memref<4x128xbf16, #tpu.memory_space<vmem>>, %arg2: memref<4x4xbf16, #tpu.memory_space<vmem>>, %arg3: memref<4x1xf32, #tpu.memory_space<vmem>>, %arg4: memref<1x4x2xf32, #tpu.memory_space<vmem>>) attributes {dimension_semantics = [#tpu.dimension_semantics<parallel>], iteration_bounds = array<i64: 4>, scalar_prefetch = 0 : i64, scratch_operands = 0 : i64, tpu.core_type = #tpu.core_type<tc>, window_params = [{transform_indices = @transform_0, window_bounds = array<i64: 4, 128>}, {pipeline_mode = #tpu.pipeline_mode<synchronous>, transform_indices = @transform_1, window_bounds = array<i64: 4, 4>}, {pipeline_mode = #tpu.pipeline_mode<synchronous>, transform_indices = @transform_2, window_bounds = array<i64: 4, 1>}, {transform_indices = @transform_3, window_bounds = array<i64: 1, 4, 2>}]} {
    %c0 = arith.constant 0 : index
    %c0_0 = arith.constant 0 : index
    %0 = vector.load %arg2[%c0, %c0_0] : memref<4x4xbf16, #tpu.memory_space<vmem>>, vector<4x4xbf16>
    %c0_1 = arith.constant 0 : index
    %c0_2 = arith.constant 0 : index
    %1 = vector.load %arg1[%c0_1, %c0_2] : memref<4x128xbf16, #tpu.memory_space<vmem>>, vector<4x128xbf16>
    %cst = arith.constant dense<0.000000e+00> : vector<4x128xf32>
    %2 = tpu.matmul %0, %1, %cst {dimension_numbers = #tpu.dot_dimension_numbers<[1], [0], [0], [1], [0, 0, 1, 1], [], []>} : vector<4x4xbf16>, vector<4x128xbf16>, vector<4x128xf32> -> vector<4x128xf32>
    %c0_3 = arith.constant 0 : index
    %c0_4 = arith.constant 0 : index
    %3 = vector.load %arg3[%c0_3, %c0_4] : memref<4x1xf32, #tpu.memory_space<vmem>>, vector<4x1xf32>
    %4 = vector.broadcast %3 : vector<4x1xf32> to vector<4x128xf32>
    %5 = arith.addf %2, %4 : vector<4x128xf32>
    %cst_5 = arith.constant dense<0.000000e+00> : vector<4xf32>
    %6 = vector.multi_reduction <add>, %5, %cst_5 [1] : vector<4x128xf32> to vector<4xf32>
    %7 = vector.shape_cast %6 : vector<4xf32> to vector<4x1xf32>
    %c0_6 = arith.constant 0 : index
    %c0_7 = arith.constant 0 : index
    %c0_8 = arith.constant 0 : index
    %8 = vector.load %arg4[%c0_6, %c0_7, %c0_8] : memref<1x4x2xf32, #tpu.memory_space<vmem>>, vector<1x4x1xf32>
    %9 = vector.shape_cast %8 : vector<1x4x1xf32> to vector<4x1xf32>
    %10 = vector.shape_cast %7 : vector<4x1xf32> to vector<1x4x1xf32>
    tpu.vector_store %arg4[%c0_6, %c0_7, %c0_8], %10 {strides = array<i32>} : memref<1x4x2xf32, #tpu.memory_space<vmem>>, vector<1x4x1xf32>,
    %11 = arith.mulf %5, %5 : vector<4x128xf32>
    %cst_9 = arith.constant dense<0.000000e+00> : vector<4xf32>
    %12 = vector.multi_reduction <add>, %11, %cst_9 [1] : vector<4x128xf32> to vector<4xf32>
    %13 = vector.shape_cast %12 : vector<4xf32> to vector<4x1xf32>
    %c0_10 = arith.constant 0 : index
    %c0_11 = arith.constant 0 : index
    %c1 = arith.constant 1 : index
    %14 = vector.load %arg4[%c0_10, %c0_11, %c1] : memref<1x4x2xf32, #tpu.memory_space<vmem>>, vector<1x4x1xf32>
    %15 = vector.shape_cast %14 : vector<1x4x1xf32> to vector<4x1xf32>
    %16 = vector.shape_cast %13 : vector<4x1xf32> to vector<1x4x1xf32>
    tpu.vector_store %arg4[%c0_10, %c0_11, %c1], %16 {strides = array<i32>} : memref<1x4x2xf32, #tpu.memory_space<vmem>>, vector<1x4x1xf32>,
    return
  }
  func.func @transform_0(%arg0: i32) -> (i32, i32) {
    %c0_i32 = arith.constant 0 : i32
    %c0_i32_0 = arith.constant 0 : i32
    return %c0_i32, %arg0 : i32, i32
  }
  func.func @transform_1(%arg0: i32) -> (i32, i32) {
    %c0_i32 = arith.constant 0 : i32
    %c0_i32_0 = arith.constant 0 : i32
    %c0_i32_1 = arith.constant 0 : i32
    return %c0_i32, %c0_i32_0 : i32, i32
  }
  func.func @transform_2(%arg0: i32) -> (i32, i32) {
    %c0_i32 = arith.constant 0 : i32
    %c0_i32_0 = arith.constant 0 : i32
    %c0_i32_1 = arith.constant 0 : i32
    return %c0_i32, %c0_i32_0 : i32, i32
  }
  func.func @transform_3(%arg0: i32) -> (i32, i32, i32) {
    %c0_i32 = arith.constant 0 : i32
    %c0_i32_0 = arith.constant 0 : i32
    %c0_i32_1 = arith.constant 0 : i32
    return %arg0, %c0_i32, %c0_i32_0 : i32, i32, i32
  }
}

module attributes {stable_mosaic.version = 11 : i64} {
  func.func @conv1_apply_kernel(%arg0: i32, %arg1: memref<4x128xbf16, #tpu.memory_space<vmem>>, %arg2: memref<4x4xbf16, #tpu.memory_space<vmem>>, %arg3: memref<4x1xf32, #tpu.memory_space<vmem>>, %arg4: memref<4x1xf32, #tpu.memory_space<vmem>>, %arg5: memref<4x1xf32, #tpu.memory_space<vmem>>, %arg6: memref<4x128xbf16, #tpu.memory_space<vmem>>) attributes {dimension_semantics = [#tpu.dimension_semantics<parallel>], iteration_bounds = array<i64: 4>, scalar_prefetch = 0 : i64, scratch_operands = 0 : i64, tpu.core_type = #tpu.core_type<tc>, window_params = [{transform_indices = @transform_0, window_bounds = array<i64: 4, 128>}, {pipeline_mode = #tpu.pipeline_mode<synchronous>, transform_indices = @transform_1, window_bounds = array<i64: 4, 4>}, {pipeline_mode = #tpu.pipeline_mode<synchronous>, transform_indices = @transform_2, window_bounds = array<i64: 4, 1>}, {pipeline_mode = #tpu.pipeline_mode<synchronous>, transform_indices = @transform_3, window_bounds = array<i64: 4, 1>}, {pipeline_mode = #tpu.pipeline_mode<synchronous>, transform_indices = @transform_4, window_bounds = array<i64: 4, 1>}, {transform_indices = @transform_5, window_bounds = array<i64: 4, 128>}]} {
    %c0 = arith.constant 0 : index
    %c0_0 = arith.constant 0 : index
    %0 = vector.load %arg2[%c0, %c0_0] : memref<4x4xbf16, #tpu.memory_space<vmem>>, vector<4x4xbf16>
    %c0_1 = arith.constant 0 : index
    %c0_2 = arith.constant 0 : index
    %1 = vector.load %arg1[%c0_1, %c0_2] : memref<4x128xbf16, #tpu.memory_space<vmem>>, vector<4x128xbf16>
    %cst = arith.constant dense<0.000000e+00> : vector<4x128xf32>
    %2 = tpu.matmul %0, %1, %cst {dimension_numbers = #tpu.dot_dimension_numbers<[1], [0], [0], [1], [0, 0, 1, 1], [], []>} : vector<4x4xbf16>, vector<4x128xbf16>, vector<4x128xf32> -> vector<4x128xf32>
    %c0_3 = arith.constant 0 : index
    %c0_4 = arith.constant 0 : index
    %3 = vector.load %arg3[%c0_3, %c0_4] : memref<4x1xf32, #tpu.memory_space<vmem>>, vector<4x1xf32>
    %4 = vector.broadcast %3 : vector<4x1xf32> to vector<4x128xf32>
    %5 = arith.addf %2, %4 : vector<4x128xf32>
    %c0_5 = arith.constant 0 : index
    %c0_6 = arith.constant 0 : index
    %6 = vector.load %arg4[%c0_5, %c0_6] : memref<4x1xf32, #tpu.memory_space<vmem>>, vector<4x1xf32>
    %7 = vector.broadcast %6 : vector<4x1xf32> to vector<4x128xf32>
    %8 = arith.mulf %5, %7 : vector<4x128xf32>
    %c0_7 = arith.constant 0 : index
    %c0_8 = arith.constant 0 : index
    %9 = vector.load %arg5[%c0_7, %c0_8] : memref<4x1xf32, #tpu.memory_space<vmem>>, vector<4x1xf32>
    %10 = vector.broadcast %9 : vector<4x1xf32> to vector<4x128xf32>
    %11 = arith.addf %8, %10 : vector<4x128xf32>
    %cst_9 = arith.constant 0.000000e+00 : f32
    %12 = vector.broadcast %cst_9 : f32 to vector<4x128xf32>
    %13 = arith.cmpf ogt, %11, %12 : vector<4x128xf32>
    %cst_10 = arith.constant 0.000000e+00 : f32
    %14 = vector.broadcast %cst_10 : f32 to vector<4x128xf32>
    %15 = arith.minimumf %11, %14 : vector<4x128xf32>
    %16 = math.exp %15 : vector<4x128xf32>
    %cst_11 = arith.constant 1.000000e+00 : f32
    %17 = vector.broadcast %cst_11 : f32 to vector<4x128xf32>
    %18 = arith.subf %16, %17 : vector<4x128xf32>
    %19 = arith.select %13, %11, %18 : vector<4x128xi1>, vector<4x128xf32>
    %20 = arith.truncf %19 : vector<4x128xf32> to vector<4x128xbf16>
    %c0_12 = arith.constant 0 : index
    %c0_13 = arith.constant 0 : index
    %21 = vector.load %arg6[%c0_12, %c0_13] : memref<4x128xbf16, #tpu.memory_space<vmem>>, vector<4x128xbf16>
    tpu.vector_store %arg6[%c0_12, %c0_13], %20 {strides = array<i32>} : memref<4x128xbf16, #tpu.memory_space<vmem>>, vector<4x128xbf16>,
    return
  }
  func.func @transform_0(%arg0: i32) -> (i32, i32) {
    %c0_i32 = arith.constant 0 : i32
    %c0_i32_0 = arith.constant 0 : i32
    return %c0_i32, %arg0 : i32, i32
  }
  func.func @transform_1(%arg0: i32) -> (i32, i32) {
    %c0_i32 = arith.constant 0 : i32
    %c0_i32_0 = arith.constant 0 : i32
    %c0_i32_1 = arith.constant 0 : i32
    return %c0_i32, %c0_i32_0 : i32, i32
  }
  func.func @transform_2(%arg0: i32) -> (i32, i32) {
    %c0_i32 = arith.constant 0 : i32
    %c0_i32_0 = arith.constant 0 : i32
    %c0_i32_1 = arith.constant 0 : i32
    return %c0_i32, %c0_i32_0 : i32, i32
  }
  func.func @transform_3(%arg0: i32) -> (i32, i32) {
    %c0_i32 = arith.constant 0 : i32
    %c0_i32_0 = arith.constant 0 : i32
    %c0_i32_1 = arith.constant 0 : i32
    return %c0_i32, %c0_i32_0 : i32, i32
  }
  func.func @transform_4(%arg0: i32) -> (i32, i32) {
    %c0_i32 = arith.constant 0 : i32
    %c0_i32_0 = arith.constant 0 : i32
    %c0_i32_1 = arith.constant 0 : i32
    return %c0_i32, %c0_i32_0 : i32, i32
  }
  func.func @transform_5(%arg0: i32) -> (i32, i32) {
    %c0_i32 = arith.constant 0 : i32
    %c0_i32_0 = arith.constant 0 : i32
    return %c0_i32, %arg0 : i32, i32
  }
}

module attributes {stable_mosaic.version = 11 : i64} {
  func.func @conv2_stats_kernel(%arg0: i32, %arg1: i32, %arg2: memref<4x1x4x9xbf16, #tpu.memory_space<vmem>>, %arg3: memref<2x1x4x9xbf16, #tpu.memory_space<vmem>>, %arg4: memref<3x3x4x4xbf16, #tpu.memory_space<vmem>>, %arg5: memref<4x1xf32, #tpu.memory_space<vmem>>, %arg6: memref<1x1x4x2xf32, #tpu.memory_space<vmem>>) attributes {dimension_semantics = [#tpu.dimension_semantics<parallel>, #tpu.dimension_semantics<parallel>], iteration_bounds = array<i64: 2, 8>, scalar_prefetch = 0 : i64, scratch_operands = 0 : i64, tpu.core_type = #tpu.core_type<tc>, window_params = [{transform_indices = @transform_0, window_bounds = array<i64: 4, 1, 4, 9>}, {transform_indices = @transform_1, window_bounds = array<i64: 2, 1, 4, 9>}, {pipeline_mode = #tpu.pipeline_mode<synchronous>, transform_indices = @transform_2, window_bounds = array<i64: 3, 3, 4, 4>}, {pipeline_mode = #tpu.pipeline_mode<synchronous>, transform_indices = @transform_3, window_bounds = array<i64: 4, 1>}, {transform_indices = @transform_4, window_bounds = array<i64: 1, 1, 4, 2>}]} {
    %c0 = arith.constant 0 : index
    %c0_0 = arith.constant 0 : index
    %c0_1 = arith.constant 0 : index
    %c0_2 = arith.constant 0 : index
    %0 = vector.load %arg2[%c0, %c0_0, %c0_1, %c0_2] : memref<4x1x4x9xbf16, #tpu.memory_space<vmem>>, vector<1x1x4x8xbf16>
    %1 = vector.shape_cast %0 : vector<1x1x4x8xbf16> to vector<4x8xbf16>
    %c0_3 = arith.constant 0 : index
    %c0_4 = arith.constant 0 : index
    %c0_5 = arith.constant 0 : index
    %c0_6 = arith.constant 0 : index
    %2 = vector.load %arg4[%c0_3, %c0_4, %c0_5, %c0_6] : memref<3x3x4x4xbf16, #tpu.memory_space<vmem>>, vector<1x1x4x4xbf16>
    %3 = vector.shape_cast %2 : vector<1x1x4x4xbf16> to vector<4x4xbf16>
    %cst = arith.constant dense<0.000000e+00> : vector<4x8xf32>
    %4 = tpu.matmul %3, %1, %cst {dimension_numbers = #tpu.dot_dimension_numbers<[1], [0], [0], [1], [0, 0, 1, 1], [], []>} : vector<4x4xbf16>, vector<4x8xbf16>, vector<4x8xf32> -> vector<4x8xf32>
    %c1 = arith.constant 1 : index
    %c0_7 = arith.constant 0 : index
    %c0_8 = arith.constant 0 : index
    %c0_9 = arith.constant 0 : index
    %5 = vector.load %arg2[%c1, %c0_7, %c0_8, %c0_9] : memref<4x1x4x9xbf16, #tpu.memory_space<vmem>>, vector<1x1x4x8xbf16>
    %6 = vector.shape_cast %5 : vector<1x1x4x8xbf16> to vector<4x8xbf16>
    %c0_10 = arith.constant 0 : index
    %c1_11 = arith.constant 1 : index
    %c0_12 = arith.constant 0 : index
    %c0_13 = arith.constant 0 : index
    %7 = vector.load %arg4[%c0_10, %c1_11, %c0_12, %c0_13] : memref<3x3x4x4xbf16, #tpu.memory_space<vmem>>, vector<1x1x4x4xbf16>
    %8 = vector.shape_cast %7 : vector<1x1x4x4xbf16> to vector<4x4xbf16>
    %cst_14 = arith.constant dense<0.000000e+00> : vector<4x8xf32>
    %9 = tpu.matmul %8, %6, %cst_14 {dimension_numbers = #tpu.dot_dimension_numbers<[1], [0], [0], [1], [0, 0, 1, 1], [], []>} : vector<4x4xbf16>, vector<4x8xbf16>, vector<4x8xf32> -> vector<4x8xf32>
    %10 = arith.addf %4, %9 : vector<4x8xf32>
    %c0_15 = arith.constant 0 : index
    %c0_16 = arith.constant 0 : index
    %c0_17 = arith.constant 0 : index
    %c1_18 = arith.constant 1 : index
    %11 = vector.load %arg2[%c0_15, %c0_16, %c0_17, %c1_18] : memref<4x1x4x9xbf16, #tpu.memory_space<vmem>>, vector<1x1x4x8xbf16>
    %12 = vector.shape_cast %11 : vector<1x1x4x8xbf16> to vector<4x8xbf16>
    %c0_19 = arith.constant 0 : index
    %c2 = arith.constant 2 : index
    %c0_20 = arith.constant 0 : index
    %c0_21 = arith.constant 0 : index
    %13 = vector.load %arg4[%c0_19, %c2, %c0_20, %c0_21] : memref<3x3x4x4xbf16, #tpu.memory_space<vmem>>, vector<1x1x4x4xbf16>
    %14 = vector.shape_cast %13 : vector<1x1x4x4xbf16> to vector<4x4xbf16>
    %cst_22 = arith.constant dense<0.000000e+00> : vector<4x8xf32>
    %15 = tpu.matmul %14, %12, %cst_22 {dimension_numbers = #tpu.dot_dimension_numbers<[1], [0], [0], [1], [0, 0, 1, 1], [], []>} : vector<4x4xbf16>, vector<4x8xbf16>, vector<4x8xf32> -> vector<4x8xf32>
    %16 = arith.addf %10, %15 : vector<4x8xf32>
    %c2_23 = arith.constant 2 : index
    %c0_24 = arith.constant 0 : index
    %c0_25 = arith.constant 0 : index
    %c0_26 = arith.constant 0 : index
    %17 = vector.load %arg2[%c2_23, %c0_24, %c0_25, %c0_26] : memref<4x1x4x9xbf16, #tpu.memory_space<vmem>>, vector<1x1x4x8xbf16>
    %18 = vector.shape_cast %17 : vector<1x1x4x8xbf16> to vector<4x8xbf16>
    %c1_27 = arith.constant 1 : index
    %c0_28 = arith.constant 0 : index
    %c0_29 = arith.constant 0 : index
    %c0_30 = arith.constant 0 : index
    %19 = vector.load %arg4[%c1_27, %c0_28, %c0_29, %c0_30] : memref<3x3x4x4xbf16, #tpu.memory_space<vmem>>, vector<1x1x4x4xbf16>
    %20 = vector.shape_cast %19 : vector<1x1x4x4xbf16> to vector<4x4xbf16>
    %cst_31 = arith.constant dense<0.000000e+00> : vector<4x8xf32>
    %21 = tpu.matmul %20, %18, %cst_31 {dimension_numbers = #tpu.dot_dimension_numbers<[1], [0], [0], [1], [0, 0, 1, 1], [], []>} : vector<4x4xbf16>, vector<4x8xbf16>, vector<4x8xf32> -> vector<4x8xf32>
    %22 = arith.addf %16, %21 : vector<4x8xf32>
    %c3 = arith.constant 3 : index
    %c0_32 = arith.constant 0 : index
    %c0_33 = arith.constant 0 : index
    %c0_34 = arith.constant 0 : index
    %23 = vector.load %arg2[%c3, %c0_32, %c0_33, %c0_34] : memref<4x1x4x9xbf16, #tpu.memory_space<vmem>>, vector<1x1x4x8xbf16>
    %24 = vector.shape_cast %23 : vector<1x1x4x8xbf16> to vector<4x8xbf16>
    %c1_35 = arith.constant 1 : index
    %c1_36 = arith.constant 1 : index
    %c0_37 = arith.constant 0 : index
    %c0_38 = arith.constant 0 : index
    %25 = vector.load %arg4[%c1_35, %c1_36, %c0_37, %c0_38] : memref<3x3x4x4xbf16, #tpu.memory_space<vmem>>, vector<1x1x4x4xbf16>
    %26 = vector.shape_cast %25 : vector<1x1x4x4xbf16> to vector<4x4xbf16>
    %cst_39 = arith.constant dense<0.000000e+00> : vector<4x8xf32>
    %27 = tpu.matmul %26, %24, %cst_39 {dimension_numbers = #tpu.dot_dimension_numbers<[1], [0], [0], [1], [0, 0, 1, 1], [], []>} : vector<4x4xbf16>, vector<4x8xbf16>, vector<4x8xf32> -> vector<4x8xf32>
    %28 = arith.addf %22, %27 : vector<4x8xf32>
    %c2_40 = arith.constant 2 : index
    %c0_41 = arith.constant 0 : index
    %c0_42 = arith.constant 0 : index
    %c1_43 = arith.constant 1 : index
    %29 = vector.load %arg2[%c2_40, %c0_41, %c0_42, %c1_43] : memref<4x1x4x9xbf16, #tpu.memory_space<vmem>>, vector<1x1x4x8xbf16>
    %30 = vector.shape_cast %29 : vector<1x1x4x8xbf16> to vector<4x8xbf16>
    %c1_44 = arith.constant 1 : index
    %c2_45 = arith.constant 2 : index
    %c0_46 = arith.constant 0 : index
    %c0_47 = arith.constant 0 : index
    %31 = vector.load %arg4[%c1_44, %c2_45, %c0_46, %c0_47] : memref<3x3x4x4xbf16, #tpu.memory_space<vmem>>, vector<1x1x4x4xbf16>
    %32 = vector.shape_cast %31 : vector<1x1x4x4xbf16> to vector<4x4xbf16>
    %cst_48 = arith.constant dense<0.000000e+00> : vector<4x8xf32>
    %33 = tpu.matmul %32, %30, %cst_48 {dimension_numbers = #tpu.dot_dimension_numbers<[1], [0], [0], [1], [0, 0, 1, 1], [], []>} : vector<4x4xbf16>, vector<4x8xbf16>, vector<4x8xf32> -> vector<4x8xf32>
    %34 = arith.addf %28, %33 : vector<4x8xf32>
    %c0_49 = arith.constant 0 : index
    %c0_50 = arith.constant 0 : index
    %c0_51 = arith.constant 0 : index
    %c0_52 = arith.constant 0 : index
    %35 = vector.load %arg3[%c0_49, %c0_50, %c0_51, %c0_52] : memref<2x1x4x9xbf16, #tpu.memory_space<vmem>>, vector<1x1x4x8xbf16>
    %36 = vector.shape_cast %35 : vector<1x1x4x8xbf16> to vector<4x8xbf16>
    %c2_53 = arith.constant 2 : index
    %c0_54 = arith.constant 0 : index
    %c0_55 = arith.constant 0 : index
    %c0_56 = arith.constant 0 : index
    %37 = vector.load %arg4[%c2_53, %c0_54, %c0_55, %c0_56] : memref<3x3x4x4xbf16, #tpu.memory_space<vmem>>, vector<1x1x4x4xbf16>
    %38 = vector.shape_cast %37 : vector<1x1x4x4xbf16> to vector<4x4xbf16>
    %cst_57 = arith.constant dense<0.000000e+00> : vector<4x8xf32>
    %39 = tpu.matmul %38, %36, %cst_57 {dimension_numbers = #tpu.dot_dimension_numbers<[1], [0], [0], [1], [0, 0, 1, 1], [], []>} : vector<4x4xbf16>, vector<4x8xbf16>, vector<4x8xf32> -> vector<4x8xf32>
    %40 = arith.addf %34, %39 : vector<4x8xf32>
    %c1_58 = arith.constant 1 : index
    %c0_59 = arith.constant 0 : index
    %c0_60 = arith.constant 0 : index
    %c0_61 = arith.constant 0 : index
    %41 = vector.load %arg3[%c1_58, %c0_59, %c0_60, %c0_61] : memref<2x1x4x9xbf16, #tpu.memory_space<vmem>>, vector<1x1x4x8xbf16>
    %42 = vector.shape_cast %41 : vector<1x1x4x8xbf16> to vector<4x8xbf16>
    %c2_62 = arith.constant 2 : index
    %c1_63 = arith.constant 1 : index
    %c0_64 = arith.constant 0 : index
    %c0_65 = arith.constant 0 : index
    %43 = vector.load %arg4[%c2_62, %c1_63, %c0_64, %c0_65] : memref<3x3x4x4xbf16, #tpu.memory_space<vmem>>, vector<1x1x4x4xbf16>
    %44 = vector.shape_cast %43 : vector<1x1x4x4xbf16> to vector<4x4xbf16>
    %cst_66 = arith.constant dense<0.000000e+00> : vector<4x8xf32>
    %45 = tpu.matmul %44, %42, %cst_66 {dimension_numbers = #tpu.dot_dimension_numbers<[1], [0], [0], [1], [0, 0, 1, 1], [], []>} : vector<4x4xbf16>, vector<4x8xbf16>, vector<4x8xf32> -> vector<4x8xf32>
    %46 = arith.addf %40, %45 : vector<4x8xf32>
    %c0_67 = arith.constant 0 : index
    %c0_68 = arith.constant 0 : index
    %c0_69 = arith.constant 0 : index
    %c1_70 = arith.constant 1 : index
    %47 = vector.load %arg3[%c0_67, %c0_68, %c0_69, %c1_70] : memref<2x1x4x9xbf16, #tpu.memory_space<vmem>>, vector<1x1x4x8xbf16>
    %48 = vector.shape_cast %47 : vector<1x1x4x8xbf16> to vector<4x8xbf16>
    %c2_71 = arith.constant 2 : index
    %c2_72 = arith.constant 2 : index
    %c0_73 = arith.constant 0 : index
    %c0_74 = arith.constant 0 : index
    %49 = vector.load %arg4[%c2_71, %c2_72, %c0_73, %c0_74] : memref<3x3x4x4xbf16, #tpu.memory_space<vmem>>, vector<1x1x4x4xbf16>
    %50 = vector.shape_cast %49 : vector<1x1x4x4xbf16> to vector<4x4xbf16>
    %cst_75 = arith.constant dense<0.000000e+00> : vector<4x8xf32>
    %51 = tpu.matmul %50, %48, %cst_75 {dimension_numbers = #tpu.dot_dimension_numbers<[1], [0], [0], [1], [0, 0, 1, 1], [], []>} : vector<4x4xbf16>, vector<4x8xbf16>, vector<4x8xf32> -> vector<4x8xf32>
    %52 = arith.addf %46, %51 : vector<4x8xf32>
    %c0_76 = arith.constant 0 : index
    %c0_77 = arith.constant 0 : index
    %53 = vector.load %arg5[%c0_76, %c0_77] : memref<4x1xf32, #tpu.memory_space<vmem>>, vector<4x1xf32>
    %54 = vector.broadcast %53 : vector<4x1xf32> to vector<4x8xf32>
    %55 = arith.addf %52, %54 : vector<4x8xf32>
    %cst_78 = arith.constant dense<0.000000e+00> : vector<4xf32>
    %56 = vector.multi_reduction <add>, %55, %cst_78 [1] : vector<4x8xf32> to vector<4xf32>
    %57 = vector.shape_cast %56 : vector<4xf32> to vector<4x1xf32>
    %c0_79 = arith.constant 0 : index
    %c0_80 = arith.constant 0 : index
    %c0_81 = arith.constant 0 : index
    %c0_82 = arith.constant 0 : index
    %58 = vector.load %arg6[%c0_79, %c0_80, %c0_81, %c0_82] : memref<1x1x4x2xf32, #tpu.memory_space<vmem>>, vector<1x1x4x1xf32>
    %59 = vector.shape_cast %58 : vector<1x1x4x1xf32> to vector<4x1xf32>
    %60 = vector.shape_cast %57 : vector<4x1xf32> to vector<1x1x4x1xf32>
    tpu.vector_store %arg6[%c0_79, %c0_80, %c0_81, %c0_82], %60 {strides = array<i32>} : memref<1x1x4x2xf32, #tpu.memory_space<vmem>>, vector<1x1x4x1xf32>,
    %61 = arith.mulf %55, %55 : vector<4x8xf32>
    %cst_83 = arith.constant dense<0.000000e+00> : vector<4xf32>
    %62 = vector.multi_reduction <add>, %61, %cst_83 [1] : vector<4x8xf32> to vector<4xf32>
    %63 = vector.shape_cast %62 : vector<4xf32> to vector<4x1xf32>
    %c0_84 = arith.constant 0 : index
    %c0_85 = arith.constant 0 : index
    %c0_86 = arith.constant 0 : index
    %c1_87 = arith.constant 1 : index
    %64 = vector.load %arg6[%c0_84, %c0_85, %c0_86, %c1_87] : memref<1x1x4x2xf32, #tpu.memory_space<vmem>>, vector<1x1x4x1xf32>
    %65 = vector.shape_cast %64 : vector<1x1x4x1xf32> to vector<4x1xf32>
    %66 = vector.shape_cast %63 : vector<4x1xf32> to vector<1x1x4x1xf32>
    tpu.vector_store %arg6[%c0_84, %c0_85, %c0_86, %c1_87], %66 {strides = array<i32>} : memref<1x1x4x2xf32, #tpu.memory_space<vmem>>, vector<1x1x4x1xf32>,
    return
  }
  func.func @transform_0(%arg0: i32, %arg1: i32) -> (i32, i32, i32, i32) {
    %c0_i32 = arith.constant 0 : i32
    %c0_i32_0 = arith.constant 0 : i32
    %c0_i32_1 = arith.constant 0 : i32
    return %arg0, %arg1, %c0_i32, %c0_i32_0 : i32, i32, i32, i32
  }
  func.func @transform_1(%arg0: i32, %arg1: i32) -> (i32, i32, i32, i32) {
    %c2_i32 = arith.constant 2 : i32
    %0 = arith.muli %c2_i32, %arg0 : i32
    %c1_i32 = arith.constant 1 : i32
    %1 = arith.addi %arg1, %c1_i32 : i32
    %c0_i32 = arith.constant 0 : i32
    %c0_i32_0 = arith.constant 0 : i32
    %c0_i32_1 = arith.constant 0 : i32
    return %0, %1, %c0_i32, %c0_i32_0 : i32, i32, i32, i32
  }
  func.func @transform_2(%arg0: i32, %arg1: i32) -> (i32, i32, i32, i32) {
    %c0_i32 = arith.constant 0 : i32
    %c0_i32_0 = arith.constant 0 : i32
    %c0_i32_1 = arith.constant 0 : i32
    %c0_i32_2 = arith.constant 0 : i32
    %c0_i32_3 = arith.constant 0 : i32
    return %c0_i32, %c0_i32_0, %c0_i32_1, %c0_i32_2 : i32, i32, i32, i32
  }
  func.func @transform_3(%arg0: i32, %arg1: i32) -> (i32, i32) {
    %c0_i32 = arith.constant 0 : i32
    %c0_i32_0 = arith.constant 0 : i32
    %c0_i32_1 = arith.constant 0 : i32
    return %c0_i32, %c0_i32_0 : i32, i32
  }
  func.func @transform_4(%arg0: i32, %arg1: i32) -> (i32, i32, i32, i32) {
    %c0_i32 = arith.constant 0 : i32
    %c0_i32_0 = arith.constant 0 : i32
    %c0_i32_1 = arith.constant 0 : i32
    return %arg0, %arg1, %c0_i32, %c0_i32_0 : i32, i32, i32, i32
  }
}

module attributes {stable_mosaic.version = 11 : i64} {
  func.func @conv2_res_kernel(%arg0: i32, %arg1: i32, %arg2: memref<4x1x4x9xbf16, #tpu.memory_space<vmem>>, %arg3: memref<2x1x4x9xbf16, #tpu.memory_space<vmem>>, %arg4: memref<1x1x4x8xbf16, #tpu.memory_space<vmem>>, %arg5: memref<3x3x4x4xbf16, #tpu.memory_space<vmem>>, %arg6: memref<4x1xf32, #tpu.memory_space<vmem>>, %arg7: memref<4x1xf32, #tpu.memory_space<vmem>>, %arg8: memref<4x1xf32, #tpu.memory_space<vmem>>, %arg9: memref<16x8xbf16, #tpu.memory_space<vmem>>, %arg10: memref<16x1xf32, #tpu.memory_space<vmem>>, %arg11: memref<1x1x16x8xf32, #tpu.memory_space<vmem>>, %arg12: memref<1x1x16x2xf32, #tpu.memory_space<vmem>>, %arg13: memref<8x8xbf16, #tpu.memory_space<vmem>>) attributes {dimension_semantics = [#tpu.dimension_semantics<parallel>, #tpu.dimension_semantics<parallel>], iteration_bounds = array<i64: 2, 8>, scalar_prefetch = 0 : i64, scratch_operands = 1 : i64, tpu.core_type = #tpu.core_type<tc>, window_params = [{transform_indices = @transform_0, window_bounds = array<i64: 4, 1, 4, 9>}, {transform_indices = @transform_1, window_bounds = array<i64: 2, 1, 4, 9>}, {transform_indices = @transform_2, window_bounds = array<i64: 1, 1, 4, 8>}, {pipeline_mode = #tpu.pipeline_mode<synchronous>, transform_indices = @transform_3, window_bounds = array<i64: 3, 3, 4, 4>}, {pipeline_mode = #tpu.pipeline_mode<synchronous>, transform_indices = @transform_4, window_bounds = array<i64: 4, 1>}, {pipeline_mode = #tpu.pipeline_mode<synchronous>, transform_indices = @transform_5, window_bounds = array<i64: 4, 1>}, {pipeline_mode = #tpu.pipeline_mode<synchronous>, transform_indices = @transform_6, window_bounds = array<i64: 4, 1>}, {pipeline_mode = #tpu.pipeline_mode<synchronous>, transform_indices = @transform_7, window_bounds = array<i64: 16, 8>}, {pipeline_mode = #tpu.pipeline_mode<synchronous>, transform_indices = @transform_8, window_bounds = array<i64: 16, 1>}, {transform_indices = @transform_9, window_bounds = array<i64: 1, 1, 16, 8>}, {transform_indices = @transform_10, window_bounds = array<i64: 1, 1, 16, 2>}]} {
    %c0 = arith.constant 0 : index
    %c0_0 = arith.constant 0 : index
    %c0_1 = arith.constant 0 : index
    %c0_2 = arith.constant 0 : index
    %0 = vector.load %arg2[%c0, %c0_0, %c0_1, %c0_2] : memref<4x1x4x9xbf16, #tpu.memory_space<vmem>>, vector<1x1x4x8xbf16>
    %1 = vector.shape_cast %0 : vector<1x1x4x8xbf16> to vector<4x8xbf16>
    %c0_3 = arith.constant 0 : index
    %c0_4 = arith.constant 0 : index
    %c0_5 = arith.constant 0 : index
    %c0_6 = arith.constant 0 : index
    %2 = vector.load %arg5[%c0_3, %c0_4, %c0_5, %c0_6] : memref<3x3x4x4xbf16, #tpu.memory_space<vmem>>, vector<1x1x4x4xbf16>
    %3 = vector.shape_cast %2 : vector<1x1x4x4xbf16> to vector<4x4xbf16>
    %cst = arith.constant dense<0.000000e+00> : vector<4x8xf32>
    %4 = tpu.matmul %3, %1, %cst {dimension_numbers = #tpu.dot_dimension_numbers<[1], [0], [0], [1], [0, 0, 1, 1], [], []>} : vector<4x4xbf16>, vector<4x8xbf16>, vector<4x8xf32> -> vector<4x8xf32>
    %c1 = arith.constant 1 : index
    %c0_7 = arith.constant 0 : index
    %c0_8 = arith.constant 0 : index
    %c0_9 = arith.constant 0 : index
    %5 = vector.load %arg2[%c1, %c0_7, %c0_8, %c0_9] : memref<4x1x4x9xbf16, #tpu.memory_space<vmem>>, vector<1x1x4x8xbf16>
    %6 = vector.shape_cast %5 : vector<1x1x4x8xbf16> to vector<4x8xbf16>
    %c0_10 = arith.constant 0 : index
    %c1_11 = arith.constant 1 : index
    %c0_12 = arith.constant 0 : index
    %c0_13 = arith.constant 0 : index
    %7 = vector.load %arg5[%c0_10, %c1_11, %c0_12, %c0_13] : memref<3x3x4x4xbf16, #tpu.memory_space<vmem>>, vector<1x1x4x4xbf16>
    %8 = vector.shape_cast %7 : vector<1x1x4x4xbf16> to vector<4x4xbf16>
    %cst_14 = arith.constant dense<0.000000e+00> : vector<4x8xf32>
    %9 = tpu.matmul %8, %6, %cst_14 {dimension_numbers = #tpu.dot_dimension_numbers<[1], [0], [0], [1], [0, 0, 1, 1], [], []>} : vector<4x4xbf16>, vector<4x8xbf16>, vector<4x8xf32> -> vector<4x8xf32>
    %10 = arith.addf %4, %9 : vector<4x8xf32>
    %c0_15 = arith.constant 0 : index
    %c0_16 = arith.constant 0 : index
    %c0_17 = arith.constant 0 : index
    %c1_18 = arith.constant 1 : index
    %11 = vector.load %arg2[%c0_15, %c0_16, %c0_17, %c1_18] : memref<4x1x4x9xbf16, #tpu.memory_space<vmem>>, vector<1x1x4x8xbf16>
    %12 = vector.shape_cast %11 : vector<1x1x4x8xbf16> to vector<4x8xbf16>
    %c0_19 = arith.constant 0 : index
    %c2 = arith.constant 2 : index
    %c0_20 = arith.constant 0 : index
    %c0_21 = arith.constant 0 : index
    %13 = vector.load %arg5[%c0_19, %c2, %c0_20, %c0_21] : memref<3x3x4x4xbf16, #tpu.memory_space<vmem>>, vector<1x1x4x4xbf16>
    %14 = vector.shape_cast %13 : vector<1x1x4x4xbf16> to vector<4x4xbf16>
    %cst_22 = arith.constant dense<0.000000e+00> : vector<4x8xf32>
    %15 = tpu.matmul %14, %12, %cst_22 {dimension_numbers = #tpu.dot_dimension_numbers<[1], [0], [0], [1], [0, 0, 1, 1], [], []>} : vector<4x4xbf16>, vector<4x8xbf16>, vector<4x8xf32> -> vector<4x8xf32>
    %16 = arith.addf %10, %15 : vector<4x8xf32>
    %c2_23 = arith.constant 2 : index
    %c0_24 = arith.constant 0 : index
    %c0_25 = arith.constant 0 : index
    %c0_26 = arith.constant 0 : index
    %17 = vector.load %arg2[%c2_23, %c0_24, %c0_25, %c0_26] : memref<4x1x4x9xbf16, #tpu.memory_space<vmem>>, vector<1x1x4x8xbf16>
    %18 = vector.shape_cast %17 : vector<1x1x4x8xbf16> to vector<4x8xbf16>
    %c1_27 = arith.constant 1 : index
    %c0_28 = arith.constant 0 : index
    %c0_29 = arith.constant 0 : index
    %c0_30 = arith.constant 0 : index
    %19 = vector.load %arg5[%c1_27, %c0_28, %c0_29, %c0_30] : memref<3x3x4x4xbf16, #tpu.memory_space<vmem>>, vector<1x1x4x4xbf16>
    %20 = vector.shape_cast %19 : vector<1x1x4x4xbf16> to vector<4x4xbf16>
    %cst_31 = arith.constant dense<0.000000e+00> : vector<4x8xf32>
    %21 = tpu.matmul %20, %18, %cst_31 {dimension_numbers = #tpu.dot_dimension_numbers<[1], [0], [0], [1], [0, 0, 1, 1], [], []>} : vector<4x4xbf16>, vector<4x8xbf16>, vector<4x8xf32> -> vector<4x8xf32>
    %22 = arith.addf %16, %21 : vector<4x8xf32>
    %c3 = arith.constant 3 : index
    %c0_32 = arith.constant 0 : index
    %c0_33 = arith.constant 0 : index
    %c0_34 = arith.constant 0 : index
    %23 = vector.load %arg2[%c3, %c0_32, %c0_33, %c0_34] : memref<4x1x4x9xbf16, #tpu.memory_space<vmem>>, vector<1x1x4x8xbf16>
    %24 = vector.shape_cast %23 : vector<1x1x4x8xbf16> to vector<4x8xbf16>
    %c1_35 = arith.constant 1 : index
    %c1_36 = arith.constant 1 : index
    %c0_37 = arith.constant 0 : index
    %c0_38 = arith.constant 0 : index
    %25 = vector.load %arg5[%c1_35, %c1_36, %c0_37, %c0_38] : memref<3x3x4x4xbf16, #tpu.memory_space<vmem>>, vector<1x1x4x4xbf16>
    %26 = vector.shape_cast %25 : vector<1x1x4x4xbf16> to vector<4x4xbf16>
    %cst_39 = arith.constant dense<0.000000e+00> : vector<4x8xf32>
    %27 = tpu.matmul %26, %24, %cst_39 {dimension_numbers = #tpu.dot_dimension_numbers<[1], [0], [0], [1], [0, 0, 1, 1], [], []>} : vector<4x4xbf16>, vector<4x8xbf16>, vector<4x8xf32> -> vector<4x8xf32>
    %28 = arith.addf %22, %27 : vector<4x8xf32>
    %c2_40 = arith.constant 2 : index
    %c0_41 = arith.constant 0 : index
    %c0_42 = arith.constant 0 : index
    %c1_43 = arith.constant 1 : index
    %29 = vector.load %arg2[%c2_40, %c0_41, %c0_42, %c1_43] : memref<4x1x4x9xbf16, #tpu.memory_space<vmem>>, vector<1x1x4x8xbf16>
    %30 = vector.shape_cast %29 : vector<1x1x4x8xbf16> to vector<4x8xbf16>
    %c1_44 = arith.constant 1 : index
    %c2_45 = arith.constant 2 : index
    %c0_46 = arith.constant 0 : index
    %c0_47 = arith.constant 0 : index
    %31 = vector.load %arg5[%c1_44, %c2_45, %c0_46, %c0_47] : memref<3x3x4x4xbf16, #tpu.memory_space<vmem>>, vector<1x1x4x4xbf16>
    %32 = vector.shape_cast %31 : vector<1x1x4x4xbf16> to vector<4x4xbf16>
    %cst_48 = arith.constant dense<0.000000e+00> : vector<4x8xf32>
    %33 = tpu.matmul %32, %30, %cst_48 {dimension_numbers = #tpu.dot_dimension_numbers<[1], [0], [0], [1], [0, 0, 1, 1], [], []>} : vector<4x4xbf16>, vector<4x8xbf16>, vector<4x8xf32> -> vector<4x8xf32>
    %34 = arith.addf %28, %33 : vector<4x8xf32>
    %c0_49 = arith.constant 0 : index
    %c0_50 = arith.constant 0 : index
    %c0_51 = arith.constant 0 : index
    %c0_52 = arith.constant 0 : index
    %35 = vector.load %arg3[%c0_49, %c0_50, %c0_51, %c0_52] : memref<2x1x4x9xbf16, #tpu.memory_space<vmem>>, vector<1x1x4x8xbf16>
    %36 = vector.shape_cast %35 : vector<1x1x4x8xbf16> to vector<4x8xbf16>
    %c2_53 = arith.constant 2 : index
    %c0_54 = arith.constant 0 : index
    %c0_55 = arith.constant 0 : index
    %c0_56 = arith.constant 0 : index
    %37 = vector.load %arg5[%c2_53, %c0_54, %c0_55, %c0_56] : memref<3x3x4x4xbf16, #tpu.memory_space<vmem>>, vector<1x1x4x4xbf16>
    %38 = vector.shape_cast %37 : vector<1x1x4x4xbf16> to vector<4x4xbf16>
    %cst_57 = arith.constant dense<0.000000e+00> : vector<4x8xf32>
    %39 = tpu.matmul %38, %36, %cst_57 {dimension_numbers = #tpu.dot_dimension_numbers<[1], [0], [0], [1], [0, 0, 1, 1], [], []>} : vector<4x4xbf16>, vector<4x8xbf16>, vector<4x8xf32> -> vector<4x8xf32>
    %40 = arith.addf %34, %39 : vector<4x8xf32>
    %c1_58 = arith.constant 1 : index
    %c0_59 = arith.constant 0 : index
    %c0_60 = arith.constant 0 : index
    %c0_61 = arith.constant 0 : index
    %41 = vector.load %arg3[%c1_58, %c0_59, %c0_60, %c0_61] : memref<2x1x4x9xbf16, #tpu.memory_space<vmem>>, vector<1x1x4x8xbf16>
    %42 = vector.shape_cast %41 : vector<1x1x4x8xbf16> to vector<4x8xbf16>
    %c2_62 = arith.constant 2 : index
    %c1_63 = arith.constant 1 : index
    %c0_64 = arith.constant 0 : index
    %c0_65 = arith.constant 0 : index
    %43 = vector.load %arg5[%c2_62, %c1_63, %c0_64, %c0_65] : memref<3x3x4x4xbf16, #tpu.memory_space<vmem>>, vector<1x1x4x4xbf16>
    %44 = vector.shape_cast %43 : vector<1x1x4x4xbf16> to vector<4x4xbf16>
    %cst_66 = arith.constant dense<0.000000e+00> : vector<4x8xf32>
    %45 = tpu.matmul %44, %42, %cst_66 {dimension_numbers = #tpu.dot_dimension_numbers<[1], [0], [0], [1], [0, 0, 1, 1], [], []>} : vector<4x4xbf16>, vector<4x8xbf16>, vector<4x8xf32> -> vector<4x8xf32>
    %46 = arith.addf %40, %45 : vector<4x8xf32>
    %c0_67 = arith.constant 0 : index
    %c0_68 = arith.constant 0 : index
    %c0_69 = arith.constant 0 : index
    %c1_70 = arith.constant 1 : index
    %47 = vector.load %arg3[%c0_67, %c0_68, %c0_69, %c1_70] : memref<2x1x4x9xbf16, #tpu.memory_space<vmem>>, vector<1x1x4x8xbf16>
    %48 = vector.shape_cast %47 : vector<1x1x4x8xbf16> to vector<4x8xbf16>
    %c2_71 = arith.constant 2 : index
    %c2_72 = arith.constant 2 : index
    %c0_73 = arith.constant 0 : index
    %c0_74 = arith.constant 0 : index
    %49 = vector.load %arg5[%c2_71, %c2_72, %c0_73, %c0_74] : memref<3x3x4x4xbf16, #tpu.memory_space<vmem>>, vector<1x1x4x4xbf16>
    %50 = vector.shape_cast %49 : vector<1x1x4x4xbf16> to vector<4x4xbf16>
    %cst_75 = arith.constant dense<0.000000e+00> : vector<4x8xf32>
    %51 = tpu.matmul %50, %48, %cst_75 {dimension_numbers = #tpu.dot_dimension_numbers<[1], [0], [0], [1], [0, 0, 1, 1], [], []>} : vector<4x4xbf16>, vector<4x8xbf16>, vector<4x8xf32> -> vector<4x8xf32>
    %52 = arith.addf %46, %51 : vector<4x8xf32>
    %c0_76 = arith.constant 0 : index
    %c0_77 = arith.constant 0 : index
    %53 = vector.load %arg6[%c0_76, %c0_77] : memref<4x1xf32, #tpu.memory_space<vmem>>, vector<4x1xf32>
    %54 = vector.broadcast %53 : vector<4x1xf32> to vector<4x8xf32>
    %55 = arith.addf %52, %54 : vector<4x8xf32>
    %c0_78 = arith.constant 0 : index
    %c0_79 = arith.constant 0 : index
    %56 = vector.load %arg7[%c0_78, %c0_79] : memref<4x1xf32, #tpu.memory_space<vmem>>, vector<4x1xf32>
    %57 = vector.broadcast %56 : vector<4x1xf32> to vector<4x8xf32>
    %58 = arith.mulf %55, %57 : vector<4x8xf32>
    %c0_80 = arith.constant 0 : index
    %c0_81 = arith.constant 0 : index
    %59 = vector.load %arg8[%c0_80, %c0_81] : memref<4x1xf32, #tpu.memory_space<vmem>>, vector<4x1xf32>
    %60 = vector.broadcast %59 : vector<4x1xf32> to vector<4x8xf32>
    %61 = arith.addf %58, %60 : vector<4x8xf32>
    %cst_82 = arith.constant 0.000000e+00 : f32
    %62 = vector.broadcast %cst_82 : f32 to vector<4x8xf32>
    %63 = arith.cmpf ogt, %61, %62 : vector<4x8xf32>
    %cst_83 = arith.constant 0.000000e+00 : f32
    %64 = vector.broadcast %cst_83 : f32 to vector<4x8xf32>
    %65 = arith.minimumf %61, %64 : vector<4x8xf32>
    %66 = math.exp %65 : vector<4x8xf32>
    %cst_84 = arith.constant 1.000000e+00 : f32
    %67 = vector.broadcast %cst_84 : f32 to vector<4x8xf32>
    %68 = arith.subf %66, %67 : vector<4x8xf32>
    %69 = arith.select %63, %61, %68 : vector<4x8xi1>, vector<4x8xf32>
    %70 = arith.truncf %69 : vector<4x8xf32> to vector<4x8xbf16>
    %c0_85 = arith.constant 0 : index
    %c0_86 = arith.constant 0 : index
    %71 = vector.load %arg13[%c0_85, %c0_86] : memref<8x8xbf16, #tpu.memory_space<vmem>>, vector<4x8xbf16>
    tpu.vector_store %arg13[%c0_85, %c0_86], %70 {strides = array<i32>} : memref<8x8xbf16, #tpu.memory_space<vmem>>, vector<4x8xbf16>,
    %c0_87 = arith.constant 0 : index
    %c0_88 = arith.constant 0 : index
    %c0_89 = arith.constant 0 : index
    %c0_90 = arith.constant 0 : index
    %72 = vector.load %arg4[%c0_87, %c0_88, %c0_89, %c0_90] : memref<1x1x4x8xbf16, #tpu.memory_space<vmem>>, vector<1x1x4x8xbf16>
    %73 = vector.shape_cast %72 : vector<1x1x4x8xbf16> to vector<4x8xbf16>
    %c4 = arith.constant 4 : index
    %c0_91 = arith.constant 0 : index
    %74 = vector.load %arg13[%c4, %c0_91] : memref<8x8xbf16, #tpu.memory_space<vmem>>, vector<4x8xbf16>
    tpu.vector_store %arg13[%c4, %c0_91], %73 {strides = array<i32>} : memref<8x8xbf16, #tpu.memory_space<vmem>>, vector<4x8xbf16>,
    %c0_92 = arith.constant 0 : index
    %c0_93 = arith.constant 0 : index
    %75 = vector.load %arg9[%c0_92, %c0_93] : memref<16x8xbf16, #tpu.memory_space<vmem>>, vector<16x8xbf16>
    %c0_94 = arith.constant 0 : index
    %c0_95 = arith.constant 0 : index
    %76 = vector.load %arg13[%c0_94, %c0_95] : memref<8x8xbf16, #tpu.memory_space<vmem>>, vector<8x8xbf16>
    %cst_96 = arith.constant dense<0.000000e+00> : vector<16x8xf32>
    %77 = tpu.matmul %75, %76, %cst_96 {dimension_numbers = #tpu.dot_dimension_numbers<[1], [0], [0], [1], [0, 0, 1, 1], [], []>} : vector<16x8xbf16>, vector<8x8xbf16>, vector<16x8xf32> -> vector<16x8xf32>
    %c0_97 = arith.constant 0 : index
    %c0_98 = arith.constant 0 : index
    %78 = vector.load %arg10[%c0_97, %c0_98] : memref<16x1xf32, #tpu.memory_space<vmem>>, vector<16x1xf32>
    %79 = vector.broadcast %78 : vector<16x1xf32> to vector<16x8xf32>
    %80 = arith.addf %77, %79 : vector<16x8xf32>
    %c0_99 = arith.constant 0 : index
    %c0_100 = arith.constant 0 : index
    %c0_101 = arith.constant 0 : index
    %c0_102 = arith.constant 0 : index
    %81 = vector.load %arg11[%c0_99, %c0_100, %c0_101, %c0_102] : memref<1x1x16x8xf32, #tpu.memory_space<vmem>>, vector<1x1x16x8xf32>
    %82 = vector.shape_cast %81 : vector<1x1x16x8xf32> to vector<16x8xf32>
    %83 = vector.shape_cast %80 : vector<16x8xf32> to vector<1x1x16x8xf32>
    tpu.vector_store %arg11[%c0_99, %c0_100, %c0_101, %c0_102], %83 {strides = array<i32>} : memref<1x1x16x8xf32, #tpu.memory_space<vmem>>, vector<1x1x16x8xf32>,
    %cst_103 = arith.constant dense<0.000000e+00> : vector<16xf32>
    %84 = vector.multi_reduction <add>, %80, %cst_103 [1] : vector<16x8xf32> to vector<16xf32>
    %85 = vector.shape_cast %84 : vector<16xf32> to vector<16x1xf32>
    %c0_104 = arith.constant 0 : index
    %c0_105 = arith.constant 0 : index
    %c0_106 = arith.constant 0 : index
    %c0_107 = arith.constant 0 : index
    %86 = vector.load %arg12[%c0_104, %c0_105, %c0_106, %c0_107] : memref<1x1x16x2xf32, #tpu.memory_space<vmem>>, vector<1x1x16x1xf32>
    %87 = vector.shape_cast %86 : vector<1x1x16x1xf32> to vector<16x1xf32>
    %88 = vector.shape_cast %85 : vector<16x1xf32> to vector<1x1x16x1xf32>
    tpu.vector_store %arg12[%c0_104, %c0_105, %c0_106, %c0_107], %88 {strides = array<i32>} : memref<1x1x16x2xf32, #tpu.memory_space<vmem>>, vector<1x1x16x1xf32>,
    %89 = arith.mulf %80, %80 : vector<16x8xf32>
    %cst_108 = arith.constant dense<0.000000e+00> : vector<16xf32>
    %90 = vector.multi_reduction <add>, %89, %cst_108 [1] : vector<16x8xf32> to vector<16xf32>
    %91 = vector.shape_cast %90 : vector<16xf32> to vector<16x1xf32>
    %c0_109 = arith.constant 0 : index
    %c0_110 = arith.constant 0 : index
    %c0_111 = arith.constant 0 : index
    %c1_112 = arith.constant 1 : index
    %92 = vector.load %arg12[%c0_109, %c0_110, %c0_111, %c1_112] : memref<1x1x16x2xf32, #tpu.memory_space<vmem>>, vector<1x1x16x1xf32>
    %93 = vector.shape_cast %92 : vector<1x1x16x1xf32> to vector<16x1xf32>
    %94 = vector.shape_cast %91 : vector<16x1xf32> to vector<1x1x16x1xf32>
    tpu.vector_store %arg12[%c0_109, %c0_110, %c0_111, %c1_112], %94 {strides = array<i32>} : memref<1x1x16x2xf32, #tpu.memory_space<vmem>>, vector<1x1x16x1xf32>,
    return
  }
  func.func @transform_0(%arg0: i32, %arg1: i32) -> (i32, i32, i32, i32) {
    %c0_i32 = arith.constant 0 : i32
    %c0_i32_0 = arith.constant 0 : i32
    %c0_i32_1 = arith.constant 0 : i32
    return %arg0, %arg1, %c0_i32, %c0_i32_0 : i32, i32, i32, i32
  }
  func.func @transform_1(%arg0: i32, %arg1: i32) -> (i32, i32, i32, i32) {
    %c2_i32 = arith.constant 2 : i32
    %0 = arith.muli %c2_i32, %arg0 : i32
    %c1_i32 = arith.constant 1 : i32
    %1 = arith.addi %arg1, %c1_i32 : i32
    %c0_i32 = arith.constant 0 : i32
    %c0_i32_0 = arith.constant 0 : i32
    %c0_i32_1 = arith.constant 0 : i32
    return %0, %1, %c0_i32, %c0_i32_0 : i32, i32, i32, i32
  }
  func.func @transform_2(%arg0: i32, %arg1: i32) -> (i32, i32, i32, i32) {
    %c0_i32 = arith.constant 0 : i32
    %c0_i32_0 = arith.constant 0 : i32
    %c0_i32_1 = arith.constant 0 : i32
    return %arg0, %arg1, %c0_i32, %c0_i32_0 : i32, i32, i32, i32
  }
  func.func @transform_3(%arg0: i32, %arg1: i32) -> (i32, i32, i32, i32) {
    %c0_i32 = arith.constant 0 : i32
    %c0_i32_0 = arith.constant 0 : i32
    %c0_i32_1 = arith.constant 0 : i32
    %c0_i32_2 = arith.constant 0 : i32
    %c0_i32_3 = arith.constant 0 : i32
    return %c0_i32, %c0_i32_0, %c0_i32_1, %c0_i32_2 : i32, i32, i32, i32
  }
  func.func @transform_4(%arg0: i32, %arg1: i32) -> (i32, i32) {
    %c0_i32 = arith.constant 0 : i32
    %c0_i32_0 = arith.constant 0 : i32
    %c0_i32_1 = arith.constant 0 : i32
    return %c0_i32, %c0_i32_0 : i32, i32
  }
  func.func @transform_5(%arg0: i32, %arg1: i32) -> (i32, i32) {
    %c0_i32 = arith.constant 0 : i32
    %c0_i32_0 = arith.constant 0 : i32
    %c0_i32_1 = arith.constant 0 : i32
    return %c0_i32, %c0_i32_0 : i32, i32
  }
  func.func @transform_6(%arg0: i32, %arg1: i32) -> (i32, i32) {
    %c0_i32 = arith.constant 0 : i32
    %c0_i32_0 = arith.constant 0 : i32
    %c0_i32_1 = arith.constant 0 : i32
    return %c0_i32, %c0_i32_0 : i32, i32
  }
  func.func @transform_7(%arg0: i32, %arg1: i32) -> (i32, i32) {
    %c0_i32 = arith.constant 0 : i32
    %c0_i32_0 = arith.constant 0 : i32
    %c0_i32_1 = arith.constant 0 : i32
    return %c0_i32, %c0_i32_0 : i32, i32
  }
  func.func @transform_8(%arg0: i32, %arg1: i32) -> (i32, i32) {
    %c0_i32 = arith.constant 0 : i32
    %c0_i32_0 = arith.constant 0 : i32
    %c0_i32_1 = arith.constant 0 : i32
    return %c0_i32, %c0_i32_0 : i32, i32
  }
  func.func @transform_9(%arg0: i32, %arg1: i32) -> (i32, i32, i32, i32) {
    %c0_i32 = arith.constant 0 : i32
    %c0_i32_0 = arith.constant 0 : i32
    %c0_i32_1 = arith.constant 0 : i32
    return %arg0, %arg1, %c0_i32, %c0_i32_0 : i32, i32, i32, i32
  }
  func.func @transform_10(%arg0: i32, %arg1: i32) -> (i32, i32, i32, i32) {
    %c0_i32 = arith.constant 0 : i32
    %c0_i32_0 = arith.constant 0 : i32
    %c0_i32_1 = arith.constant 0 : i32
    return %arg0, %arg1, %c0_i32, %c0_i32_0 : i32, i32, i32, i32
  }
}

module attributes {stable_mosaic.version = 11 : i64} {
  func.func @bn_elu_kernel(%arg0: i32, %arg1: i32, %arg2: memref<1x1x16x8xf32, #tpu.memory_space<vmem>>, %arg3: memref<16x1xf32, #tpu.memory_space<vmem>>, %arg4: memref<16x1xf32, #tpu.memory_space<vmem>>, %arg5: memref<1x1x16x8xf32, #tpu.memory_space<vmem>>) attributes {dimension_semantics = [#tpu.dimension_semantics<parallel>, #tpu.dimension_semantics<parallel>], iteration_bounds = array<i64: 2, 8>, scalar_prefetch = 0 : i64, scratch_operands = 0 : i64, tpu.core_type = #tpu.core_type<tc>, window_params = [{transform_indices = @transform_0, window_bounds = array<i64: 1, 1, 16, 8>}, {pipeline_mode = #tpu.pipeline_mode<synchronous>, transform_indices = @transform_1, window_bounds = array<i64: 16, 1>}, {pipeline_mode = #tpu.pipeline_mode<synchronous>, transform_indices = @transform_2, window_bounds = array<i64: 16, 1>}, {transform_indices = @transform_3, window_bounds = array<i64: 1, 1, 16, 8>}]} {
    %c0 = arith.constant 0 : index
    %c0_0 = arith.constant 0 : index
    %c0_1 = arith.constant 0 : index
    %c0_2 = arith.constant 0 : index
    %0 = vector.load %arg2[%c0, %c0_0, %c0_1, %c0_2] : memref<1x1x16x8xf32, #tpu.memory_space<vmem>>, vector<1x1x16x8xf32>
    %1 = vector.shape_cast %0 : vector<1x1x16x8xf32> to vector<16x8xf32>
    %c0_3 = arith.constant 0 : index
    %c0_4 = arith.constant 0 : index
    %2 = vector.load %arg3[%c0_3, %c0_4] : memref<16x1xf32, #tpu.memory_space<vmem>>, vector<16x1xf32>
    %3 = vector.broadcast %2 : vector<16x1xf32> to vector<16x8xf32>
    %4 = arith.mulf %1, %3 : vector<16x8xf32>
    %c0_5 = arith.constant 0 : index
    %c0_6 = arith.constant 0 : index
    %5 = vector.load %arg4[%c0_5, %c0_6] : memref<16x1xf32, #tpu.memory_space<vmem>>, vector<16x1xf32>
    %6 = vector.broadcast %5 : vector<16x1xf32> to vector<16x8xf32>
    %7 = arith.addf %4, %6 : vector<16x8xf32>
    %cst = arith.constant 0.000000e+00 : f32
    %8 = vector.broadcast %cst : f32 to vector<16x8xf32>
    %9 = arith.cmpf ogt, %7, %8 : vector<16x8xf32>
    %cst_7 = arith.constant 0.000000e+00 : f32
    %10 = vector.broadcast %cst_7 : f32 to vector<16x8xf32>
    %11 = arith.minimumf %7, %10 : vector<16x8xf32>
    %12 = math.exp %11 : vector<16x8xf32>
    %cst_8 = arith.constant 1.000000e+00 : f32
    %13 = vector.broadcast %cst_8 : f32 to vector<16x8xf32>
    %14 = arith.subf %12, %13 : vector<16x8xf32>
    %15 = arith.select %9, %7, %14 : vector<16x8xi1>, vector<16x8xf32>
    %c0_9 = arith.constant 0 : index
    %c0_10 = arith.constant 0 : index
    %c0_11 = arith.constant 0 : index
    %c0_12 = arith.constant 0 : index
    %16 = vector.load %arg5[%c0_9, %c0_10, %c0_11, %c0_12] : memref<1x1x16x8xf32, #tpu.memory_space<vmem>>, vector<1x1x16x8xf32>
    %17 = vector.shape_cast %16 : vector<1x1x16x8xf32> to vector<16x8xf32>
    %18 = vector.shape_cast %15 : vector<16x8xf32> to vector<1x1x16x8xf32>
    tpu.vector_store %arg5[%c0_9, %c0_10, %c0_11, %c0_12], %18 {strides = array<i32>} : memref<1x1x16x8xf32, #tpu.memory_space<vmem>>, vector<1x1x16x8xf32>,
    return
  }
  func.func @transform_0(%arg0: i32, %arg1: i32) -> (i32, i32, i32, i32) {
    %c0_i32 = arith.constant 0 : i32
    %c0_i32_0 = arith.constant 0 : i32
    %c0_i32_1 = arith.constant 0 : i32
    return %arg0, %arg1, %c0_i32, %c0_i32_0 : i32, i32, i32, i32
  }
  func.func @transform_1(%arg0: i32, %arg1: i32) -> (i32, i32) {
    %c0_i32 = arith.constant 0 : i32
    %c0_i32_0 = arith.constant 0 : i32
    %c0_i32_1 = arith.constant 0 : i32
    return %c0_i32, %c0_i32_0 : i32, i32
  }
  func.func @transform_2(%arg0: i32, %arg1: i32) -> (i32, i32) {
    %c0_i32 = arith.constant 0 : i32
    %c0_i32_0 = arith.constant 0 : i32
    %c0_i32_1 = arith.constant 0 : i32
    return %c0_i32, %c0_i32_0 : i32, i32
  }
  func.func @transform_3(%arg0: i32, %arg1: i32) -> (i32, i32, i32, i32) {
    %c0_i32 = arith.constant 0 : i32
    %c0_i32_0 = arith.constant 0 : i32
    %c0_i32_1 = arith.constant 0 : i32
    return %arg0, %arg1, %c0_i32, %c0_i32_0 : i32, i32, i32, i32
  }
}

</mosaic_0001>

<bundles_post_ra>
// kernel: res_conv_forward.5
= control target key start
LH: loop header
LB: loop body
LE: loop exit
PB: predicated region body
PF: predicated region fallthrough
CT: control target
= control target key end

     0   :  { %s349_s12 = smov 0   ;;  %s372_s0 = inlined_call_operand.vmem [shape: bf16[4,512], index: 0, kind: input, shape index: {}]   ;;  %s373_s1 = inlined_call_operand.vmem [shape: bf16[4,4], index: 1, kind: input, shape index: {}]   ;;  %s374_s2 = inlined_call_operand.vmem [shape: f32[4,1], index: 2, kind: input, shape index: {}]   ;;  %s375_s3 = inlined_call_operand.vmem [shape: f32[4,4,2], index: 3, kind: output, shape index: {}]  }
   0x1 LB: > { %s288_s13 = sadd.s32 4294967295, %s324_s12   ;;  %p292_p0 = scmp.ge.s32.totalorder %s324_s12, 1  ;;  %s324_s12 = sphi %s349_s12, %s13_s12  }
   0x2   : > { %p136_p1 = scmp.lt.s32.totalorder %s324_s12, 5 }
   0x4   : > { %p137_p2 = pnand %p292_p0, %p136_p1 }
   0x5   : > { %p158_p3 = scmp.lt.s32.totalorder (!%p137_p2), %s288_s13, 3 }
   0x6   : > { %140 = sbr.rel (%p137_p2) target bundleno = 356 (0x164), region = 32 }
   0xb   : > { %v326_v0 = vmov 0.0   ;;  %vm327_vm0 = vmmov 0   ;;  %v169_v1 = vld [vmem:[%s374_s2] sm:$0xf]  ;;  %s377_s13 = smov (!%p158_p3, %s288_s13), 3  ;;  %v328_v2 = vmov 0  }
   0xc   : > { %300 = vmatprep.subr.bf16.mxu0 %v326_v0  ;;  %302 = vmatprep.mubr.msk.bf16.mxu0 %vm327_vm0, %v326_v0  ;;  %s293_s16 = sshll.u32 %s377_s13, 1  ;;  %vm179_vm1 = vcmask 1041408   ;;  %v167_v5 = vld [vmem:[%s373_s1] sm:$0x3]  ;;  %vm175_vm2 = vcmask 31744   ;;  %vm223_vm3 = vcmask 1043456  }
   0xd   : > { %317 = vset.pattern.permute.xlu0 %v328_v2  ;;  %s161_s19 = scalar_lea.vmem %s372_s0, %s293_s16  ;;  %s294_s22 = sshll.u32 %s377_s13, 2  ;;  %vm227_vm4 = vcmask 3072   ;;  %vm233_vm5 = vcmask 11272  }
   0xe   : > { %172 = vperm.xlu0 %317, %v169_v1   ;;  %v168_v3 = vld [vmem:[%s161_s19] sm:$0x3]  ;;  %s165_s25 = scalar_lea.vmem %s375_s3, %s294_s22 }
   0xf   : > { %v181_v4 = vsel %vm179_vm1, %v168_v3, 0 }
  0x10   : > { %301 = vmatpush3.bf16.msra.mxu0 %v181_v4 }
  0x13   : > { %303 = vmatmul.mubr.msk.bf16.vlgmr.msra.gmra.mxu0 %vm175_vm2, %v167_v5 }
  0x89   : > { %v173_v6 = vpop.permute.xlu0 %172 }
  0xd3   : > { %v217_v7 = vpop.f32.mrf.mxu0 }
  0xd4   : > { %v218_v8 = vadd.f32 %v217_v7, %v173_v6 }
  0xd5   : > { %v304_v9 = vpop.f32.mrf.mxu0 }
  0xd6   : > { %v224_v10 = vsel %vm223_vm3, %v218_v8, 0.0  ;;  %v229_v11 = vmul.f32 %v218_v8, %v218_v8 }
  0xd7   : > { %225 = vadd.xlane.f32.xlu0 %v224_v10  ;;  %v220_v12 = vpop.f32.mrf.mxu0 }
  0xd8   : > { %v230_v13 = vsel %vm223_vm3, %v229_v11, 0.0 }
  0xd9   : > { %231 = vadd.xlane.f32.xlu1 %v230_v13  ;;  %v305_v14 = vpop.f32.mrf.mxu0 }
 0x160   : > { %v226_v15 = vpop.xlane.xlu0 %225 }
 0x161   : > { %228 = vst.msk [vmem:[%s165_s25] sm:$0xf] %vm227_vm4, %v226_v15 }
 0x162   : > { %v232_v16 = vpop.xlane.xlu1 %231 }
 0x163   : > { %234 = vst.msk [vmem:[%s165_s25] sm:$0xf] %vm233_vm5, %v232_v16 }
 0x164 PF: > { %s13_s12 = sadd.s32 1, %s324_s12  }
 0x165   : > { %p10_p4 = scmp.ge.s32.totalorder %s13_s12, 6  }
 0x167   :  { %12 = sbr.rel (!%p10_p4) target bundleno = 1 (0x1), region = 62 }

// kernel: res_conv_forward.6
= control target key start
LH: loop header
LB: loop body
LE: loop exit
PB: predicated region body
PF: predicated region fallthrough
CT: control target
= control target key end

     0   :  { %s427_s18 = smov 0   ;;  %s459_s0 = inlined_call_operand.vmem [shape: bf16[4,512], index: 0, kind: input, shape index: {}]   ;;  %s460_s1 = inlined_call_operand.vmem [shape: bf16[4,4], index: 1, kind: input, shape index: {}]   ;;  %s461_s2 = inlined_call_operand.vmem [shape: f32[4,1], index: 2, kind: input, shape index: {}]   ;;  %s462_s3 = inlined_call_operand.vmem [shape: f32[4,1], index: 3, kind: input, shape index: {}]   ;;  %s463_s4 = inlined_call_operand.vmem [shape: f32[4,1], index: 4, kind: input, shape index: {}]   ;;  %s464_s5 = inlined_call_operand.vmem [shape: bf16[4,512], index: 5, kind: output, shape index: {}]  }
   0x1 LB: > { %s352_s19 = sadd.s32 4294967295, %s392_s18   ;;  %p356_p0 = scmp.ge.s32.totalorder %s392_s18, 1  ;;  %s392_s18 = sphi %s427_s18, %s15_s18  }
   0x2   : > { %p186_p1 = scmp.lt.s32.totalorder %s392_s18, 5 }
   0x4   : > { %p187_p2 = pnand %p356_p0, %p186_p1 }
   0x5   : > { %p212_p3 = scmp.lt.s32.totalorder (!%p187_p2), %s352_s19, 3 }
   0x6   : > { %190 = sbr.rel (%p187_p2) target bundleno = 242 (0xf2), region = 40 }
   0xb   : > { %v394_v0 = vmov 0.0   ;;  %vm395_vm0 = vmmov 0   ;;  %v223_v1 = vld [vmem:[%s461_s2] sm:$0xf]  ;;  %s466_s19 = smov (!%p212_p3, %s352_s19), 3  ;;  %v396_v2 = vmov 0  }
   0xc   : > { %365 = vmatprep.subr.bf16.mxu0 %v394_v0  ;;  %367 = vmatprep.mubr.msk.bf16.mxu0 %vm395_vm0, %v394_v0  ;;  %v284_v3 = vld [vmem:[%s463_s4] sm:$0xf]  ;;  %s357_s24 = sshll.u32 %s466_s19, 1  ;;  %vm233_vm1 = vcmask 1041408   ;;  %vm229_vm2 = vcmask 31744  }
   0xd   : > { %382 = vset.pattern.permute.xlu0 %v396_v2  ;;  %383 = vset.pattern.permute.xlu1 %v396_v2  ;;  %v277_v4 = vld [vmem:[%s462_s3] sm:$0xf]  ;;  %s215_s29 = scalar_lea.vmem %s459_s0, %s357_s24  ;;  %s219_s9 = scalar_lea.vmem %s464_s5, %s357_s24 }
   0xe   : > { %226 = vperm.xlu0 %382, %v223_v1   ;;  %287 = vperm.xlu1 %383, %v284_v3   ;;  %v222_v5 = vld [vmem:[%s215_s29] sm:$0x3] }
   0xf   : > { %v235_v6 = vsel %vm233_vm1, %v222_v5, 0  ;;  %v221_v7 = vld [vmem:[%s460_s1] sm:$0x3] }
  0x10   : > { %366 = vmatpush3.bf16.msra.mxu0 %v235_v6 }
  0x12   : > { %280 = vperm.xlu0 %382, %v277_v4  }
  0x13   : > { %368 = vmatmul.mubr.msk.bf16.vlgmr.msra.gmra.mxu0 %vm229_vm2, %v221_v7 }
  0x89   : > { %v227_v8 = vpop.permute.xlu0 %226  ;;  %v288_v11 = vpop.permute.xlu1 %287 }
  0x8d   : > { %v281_v12 = vpop.permute.xlu0 %280 }
  0xd3   : > { %v271_v9 = vpop.f32.mrf.mxu0 }
  0xd4   : > { %v272_v10 = vadd.f32 %v271_v9, %v227_v8 }
  0xd5   : > { %v369_v13 = vpop.f32.mrf.mxu0 }
  0xd6   : > { %v283_v14 = vmul.f32 %v281_v12, %v272_v10 }
  0xd7   : > { %v274_v15 = vpop.f32.mrf.mxu0 }
  0xd8   : > { %v290_v16 = vadd.f32 %v288_v11, %v283_v14 }
  0xd9   : > { %v370_v17 = vpop.f32.mrf.mxu0 }
  0xda   : > { %v292_v18 = vmin.f32 %v290_v16, 0.0  ;;  %vm291_vm3 = vcmp.gt.f32.partialorder %v290_v16, 0.0 }
  0xdc   : > { %v293_v19 = vmul.f32 1.442695, %v292_v18 }
  0xde   : > { %384 = vpow2.f32 %v293_v19 }
  0xeb   : > { %v385_v20 = vpop.eup %384 }
  0xec   : > { %v360_v21 = vadd.f32 -1.0, %v385_v20 }
  0xee   : > { %v296_v22 = vsel %vm291_vm3, %v290_v16, %v360_v21 }
  0xef   : > { %v297_v23 = vpack.c.bf16 %v296_v22, %v296_v22 }
  0xf1   : > { %298 = vst [vmem:[%s219_s9] sm:$0x3] %v297_v23 }
  0xf2 PF: > { %s15_s18 = sadd.s32 1, %s392_s18  }
  0xf3   : > { %p12_p4 = scmp.ge.s32.totalorder %s15_s18, 6  }
  0xf5   :  { %14 = sbr.rel (!%p12_p4) target bundleno = 1 (0x1), region = 70 }

// kernel: res_conv_forward.7
= control target key start
LH: loop header
LB: loop body
LE: loop exit
PB: predicated region body
PF: predicated region fallthrough
CT: control target
= control target key end

     0   :  { %s1257_s15 = smov 0   ;;  %s1259_s16 = smov 0   ;;  %s1484_s0 = inlined_call_operand.vmem [shape: bf16[8,9,4,9], index: 0, kind: input, shape index: {}, may-alias: {0,1}]   ;;  %s1485_s1 = inlined_call_operand.vmem [shape: bf16[8,9,4,9], index: 1, kind: input, shape index: {}, may-alias: {0,1}]   ;;  %s1486_s2 = inlined_call_operand.vmem [shape: bf16[3,3,4,4], index: 2, kind: input, shape index: {}]   ;;  %s1487_s3 = inlined_call_operand.vmem [shape: f32[4,1], index: 3, kind: input, shape index: {}]   ;;  %s1488_s4 = inlined_call_operand.vmem [shape: f32[2,8,4,2], index: 4, kind: output, shape index: {}]  }
   0x1   :  { %s1261_s17 = smov 0   ;;  %s1263_s18 = smov 0  }
   0x2   :  { %s1265_s19 = smov 0   ;;  %s1267_s20 = smov 0  }
   0x3   :  { %s1269_s21 = smov 0   ;;  %s1271_s22 = smov 0  }
   0x4   :  { %s1273_s23 = smov 0  }
   0x5 LB: > { %s23_s24 = sadd.s32 1, %s1217_s21  ;;  %s26_s25 = sadd.s32 1, %s1221_s22  ;;  %s1225_s23 = sphi %s1273_s23, %s14_s23   ;;  %s1221_s22 = sphi %s1271_s22, %s1501_s22   ;;  %s1217_s21 = sphi %s1269_s21, %s1500_s21   ;;  %s1213_s20 = sphi %s1267_s20, %s1499_s20   ;;  %s1209_s19 = sphi %s1265_s19, %s1498_s19   ;;  %s1205_s18 = sphi %s1263_s18, %s1497_s18   ;;  %s1201_s17 = sphi %s1261_s17, %s1496_s17   ;;  %s1197_s16 = sphi %s1259_s16, %s1495_s16   ;;  %s1193_s15 = sphi %s1257_s15, %s1494_s15  }
   0x6   : > { %p24_p0 = scmp.ge.s32.totalorder %s23_s24, 8  ;;  %s35_s26 = sadd.s32 1, %s1205_s18 }
   0x7   : > { %p42_p1 = scmp.ne.s32.totalorder %s1205_s18, %s1201_s17  ;;  %p43_p2 = scmp.eq.s32.totalorder %s1225_s23, 0 }
   0x8   : > { %s1308_s27 = scalar_select %p24_p0, 0, %s23_s24  }
   0x9   : > { %s1503_s25 = smov (!%p24_p0, %s26_s25), %s1221_s22  ;;  %p1315_p3 = por %p43_p2, %p42_p1 }
   0xa   : > { %1490 = sst [smem:[#allocation4_spill]] %s1308_s27  ;;  %s31_s28 = ssub.s32 %s1217_s21, %s1308_s27 }
   0xb   : > { %p28_p4 = scmp.ge.s32.totalorder %s1503_s25, 2  ;;  %s963_s30 = sshll.u32 %s1221_s22, 1 }
   0xc   : > { %s61_s5 = sadd.s32 1, %s1308_s27  ;;  %s67_s6 = sadd.s32 1, %s1197_s16 }
   0xd   : > { %s1505_s25 = smov (%p28_p4, %s1503_s25), 0  ;;  %s63_s7 = ssub.s32 %s23_s24, %s61_s5 }
   0xe   : > { %p74_p5 = scmp.ne.s32.totalorder %s1197_s16, %s1193_s15  ;;  %s30_s8 = ssub.s32 %s1221_s22, %s1505_s25 }
   0xf   : > { %s964_s9 = sshll.u32 %s1505_s25, 1  ;;  %s32_s10 = sor.u32 %s31_s28, %s30_s8 }
  0x10   : > { %s62_s11 = ssub.s32 %s963_s30, %s964_s9  ;;  %p33_p6 = scmp.eq.s32.totalorder %s32_s10, 0 }
  0x11   : > { %s64_s12 = sor.u32 %s63_s7, %s62_s11  ;;  %p1331_p8 = por %p74_p5, %p43_p2 }
  0x12   : > { %p65_p7 = scmp.eq.s32.totalorder %s64_s12, 0  ;;  %p966_p9 = scmp.ge.s32.totalorder %s1225_s23, 16 }
  0x13   : > { %s1336_s14 = scalar_select %p33_p6, %s1205_s18, %s35_s26  }
  0x14   : > { %s1339_s27 = scalar_select %p65_p7, %s1197_s16, %s67_s6  }
  0x15   : > { %176 = sbr.rel (%p966_p9) target bundleno = 43 (0x2b), region = 24 }
  0x1a   : > { %179 = sbr.rel (!%p1315_p3) target bundleno = 35 (0x23), region = 28  ;;  %s181_s24 = sand.u32 (%p1315_p3), 1, %s1205_s18  }
  0x1b   : > { %s1075_s28 = smul.u32 (%p1315_p3), 36, %s1221_s22  ;;  %s967_s30 = sshll.u32 (%p1315_p3), %s181_s24, 3 }
  0x1c   : > { %s183_s6 = scalar_lea.vmem (%p1315_p3), [#allocation2], %s967_s30 }
  0x1d   : > { %s186_s5 = sadd.s32 (%p1315_p3), %s1217_s21, %s1075_s28 }
  0x1e   : > { %s970_s7 = sshll.u32 (%p1315_p3), %s186_s5, 1 }
  0x1f   : > { %s188_s26 = scalar_lea.vmem %s1484_s0, %s970_s7 }
  0x20   : > { %v205_v0 = vld [vmem:[%s188_s26] sm:$0x3]  ;;  %v207_v1 = vld [vmem:[%s188_s26 + $0x12] sm:$0x3]  ;;  %v209_v2 = vld [vmem:[%s188_s26 + $0x24] sm:$0x3] }
  0x21   : > { %206 = vst [vmem:[%s183_s6] sm:$0x3] %v205_v0  ;;  %208 = vst [vmem:[%s183_s6 + $0x2] sm:$0x3] %v207_v1  ;;  %v211_v3 = vld [vmem:[%s188_s26 + $0x36] sm:$0x3] }
  0x22   : > { %210 = vst [vmem:[%s183_s6 + $0x4] sm:$0x3] %v209_v2  ;;  %212 = vst [vmem:[%s183_s6 + $0x6] sm:$0x3] %v211_v3 }
  0x23 PF: > { %244 = sbr.rel (!%p1331_p8) target bundleno = 43 (0x2b), region = 69  ;;  %s246_s29 = sand.u32 (%p1331_p8), 1, %s1197_s16  }
  0x24   : > { %s887_s10 = smul.u32 (%p1331_p8), 36, %s1221_s22  ;;  %s971_s11 = sshll.u32 (%p1331_p8), %s246_s29, 2 }
  0x25   : > { %s248_s7 = scalar_lea.vmem (%p1331_p8), [#allocation3], %s971_s11 }
  0x26   : > { %s888_s12 = sadd.s32 (%p1331_p8), %s1217_s21, %s887_s10 }
  0x27   : > { %s972_s24 = sshll.u32 (%p1331_p8), %s888_s12, 1 }
  0x28   : > { %s890_s30 = scalar_lea.vmem %s1485_s1, %s972_s24 }
  0x29   : > { %v973_v4 = vld [vmem:[%s890_s30 + $0x2] sm:$0x3]  ;;  %v974_v5 = vld [vmem:[%s890_s30 + $0x14] sm:$0x3] }
  0x2a   : > { %273 = vst [vmem:[%s248_s7] sm:$0x3] %v973_v4  ;;  %275 = vst [vmem:[%s248_s7 + $0x2] sm:$0x3] %v974_v5 }
  0x2b PF: > { %p975_p10 = scmp.ge.s32.totalorder %s1225_s23, 1  ;;  %p294_p11 = scmp.lt.s32.totalorder %s1225_s23, 17 }
  0x2d   : > { %p295_p12 = pnand %p975_p10, %p294_p11 }
  0x2e   : > { %s301_s13 = sand.u32 (!%p295_p12), 1, %s1201_s17   ;;  %s308_s9 = sand.u32 (!%p295_p12), 1, %s1193_s15  }
  0x2f   : > { %298 = sbr.rel (%p295_p12) target bundleno = 543 (0x21f), region = 103  ;;  %s976_s8 = sshll.u32 (!%p295_p12), %s301_s13, 3 }
  0x30   : > { %s1364_s26 = sshll.u32 (!%p295_p12), %s308_s9, 2  ;;  %s1370_s17 = scalar_lea.vmem (!%p295_p12), [#allocation2], %s976_s8 }
  0x31   : > { %s310_s15 = scalar_lea.vmem (!%p295_p12), [#allocation3], %s1364_s26  ;;  %s1230_s12 = smov (!%p295_p12), 127  }
  0x32   : > { %p344_p13 = scmp.lt.s32.totalorder (!%p295_p12), %s1213_s20, 1  ;;  %p346_p0 = scmp.lt.s32.totalorder (!%p295_p12), %s1209_s19, 7 }
  0x34   : > { %v459_v6 = vlaneseq  ;;  %v1227_v7 = vmov 1983009808   ;;  %v1228_v9 = vmov 0.0   ;;  %vm363_vm0 = vcmask 1041408   ;;  %v353_v11 = vld [vmem:[%s1370_s17] sm:$0x3] }
  0x35   : > { %v457_v8 = vunpack.c.l.s4 %v1227_v7  ;;  %1021 = vmatprep.subr.bf16.mxu0 %v1228_v9  ;;  %1027 = vmatprep.subr.bf16.mxu1 %v1228_v9  ;;  %vm1229_vm1 = vmmov 0   ;;  %v673_v13 = vld [vmem:[%s310_s15] sm:$0x3]  ;;  %v980_v14 = vld [vmem:[%s1370_s17 + $0x2] sm:$0x3]  ;;  %v411_v15 = vsel %vm363_vm0, %v353_v11, 0 }
  0x36   : > { %v460_v10 = vshrl.u32 %v459_v6, 7  ;;  %1023 = vmatprep.mubr.msk.bf16.mxu0 %vm1229_vm1, %v1228_v9  ;;  %1029 = vmatprep.mubr.msk.bf16.mxu1 %vm1229_vm1, %v1228_v9  ;;  %v365_v17 = vsel %vm363_vm0, %v980_v14, 0  ;;  %v354_v18 = vld [vmem:[%s1486_s2] sm:$0x3]  ;;  %v986_v19 = vld [vmem:[%s1370_s17 + $0x4] sm:$0x3] }
  0x37   : > { %v458_v12 = vunpack.c.0.s8 %v457_v8  ;;  %1028 = vmatpush3.bf16.msra.mxu1 %v411_v15  ;;  %1022 = vmatpush3.bf16.msra.mxu0 %v365_v17  ;;  %v981_v22 = vld [vmem:[%s1486_s2 + $0x2] sm:$0x3]  ;;  %vm359_vm2 = vcmask 31744   ;;  %v520_v23 = vsel %vm363_vm0, %v986_v19, 0  ;;  %v987_v25 = vld [vmem:[%s1486_s2 + $0x6] sm:$0x3] }
  0x38   : > { %1039 = vmatprep.subr.bf16.mxu1 %v1228_v9  ;;  %1033 = vmatprep.subr.bf16.mxu0 %v1228_v9  ;;  %v833_v26 = vld [vmem:[%s1487_s3] sm:$0xf]  ;;  %v1231_v27 = vmov 0   ;;  %v989_v29 = vld [vmem:[%s1370_s17 + $0x6] sm:$0x3]  ;;  %v680_v39 = vsel %vm363_vm0, %v673_v13, 0 }
  0x39   : > { %v461_v16 = vsub.s32 %v458_v12, %v460_v10  ;;  %1153 = vset.pattern.permute.xlu1 %v1231_v27  ;;  %1154 = vset.pattern.permute.xlu0 %v1231_v27  ;;  %v984_v31 = vld [vmem:[%s1486_s2 + $0x4] sm:$0x3]  ;;  %v571_v32 = vsel %vm363_vm0, %v989_v29, 0  ;;  %v996_v35 = vld [vmem:[%s310_s15 + $0x2] sm:$0x3]  ;;  %vm840_vm3 = vcmask 60416  }
  0x3a   : > { %1030 = vmatmul.mubr.msk.bf16.vlgmr.msra.gmra.mxu1 %vm359_vm2, %v354_v18  ;;  %1024 = vmatmul.mubr.msk.bf16.vlgmr.msra.gmra.mxu0 %vm359_vm2, %v981_v22  ;;  %v992_v36 = vld [vmem:[%s1486_s2 + $0xa] sm:$0x3]  ;;  %v731_v37 = vsel %vm363_vm0, %v996_v35, 0  ;;  %v990_v38 = vld [vmem:[%s1486_s2 + $0x8] sm:$0x3]  ;;  %s1507_s20 = smov (!%p344_p13, %s1213_s20), 1 }
  0x3b   : > { %v462_v20 = vrot.slane %v353_v11, %v461_v16  ;;  %v783_v21 = vrot.slane %v673_v13, %v461_v16  ;;  %v623_v24 = vrot.slane %v986_v19, %v461_v16  ;;  %1040 = vmatpush3.bf16.msra.mxu1 %v520_v23  ;;  %1035 = vmatprep.mubr.msk.bf16.mxu0 %vm1229_vm1, %v1228_v9  ;;  %v997_v40 = vld [vmem:[%s1486_s2 + $0xe] sm:$0x3]  ;;  %v994_v42 = vld [vmem:[%s1486_s2 + $0xc] sm:$0x3]  ;;  %v999_v44 = vld [vmem:[%s1486_s2 + $0x10] sm:$0x3] }
  0x3c   : > { %1041 = vmatprep.mubr.msk.bf16.mxu1 %vm1229_vm1, %v1228_v9  ;;  %1051 = vmatprep.subr.bf16.mxu1 %v1228_v9  ;;  %s1509_s19 = smov (!%p346_p0, %s1209_s19), 7  ;;  %s978_s24 = sshll.u32 %s1507_s20, 3  ;;  %vm844_vm4 = vcmask 3072   ;;  %vm850_vm5 = vcmask 11272  }
  0x3d   : > { %463 = vrot.lane.b32.xlu0 %v462_v20, %s1230_s12  ;;  %784 = vrot.lane.b32.xlu1 %v783_v21, %s1230_s12  ;;  %s349_s28 = sadd.s32 %s978_s24, %s1509_s19 }
  0x3e   : > { %s979_s5 = sshll.u32 %s349_s28, 2 }
  0x3f   : > { %s351_s13 = scalar_lea.vmem %s1488_s4, %s979_s5 }
  0x41   : > { %624 = vrot.lane.b32.xlu0 %v623_v24, %s1230_s12  ;;  %836 = vperm.xlu1 %1153, %v833_v26  }
  0x42   : > { %1042 = vmatmul.mubr.msk.bf16.vlgmr.msra.gmra.mxu1 %vm359_vm2, %v987_v25 }
  0x43   : > { %1053 = vmatprep.mubr.msk.bf16.mxu1 %vm1229_vm1, %v1228_v9 }
  0xaf   : > { %v464_v28 = vpop.permute.xlu0 %463  ;;  %v785_v41 = vpop.permute.xlu1 %784 }
  0xb0   : > { %v469_v30 = vsel %vm363_vm0, %v464_v28, 0  ;;  %v790_v43 = vsel %vm363_vm0, %v785_v41, 0 }
  0xb1   : > { %1034 = vmatpush3.bf16.msra.mxu0 %v469_v30 }
  0xb2   : > { %1045 = vmatprep.subr.bf16.mxu0 %v1228_v9 }
  0xb3   : > { %v625_v33 = vpop.permute.xlu0 %624 }
  0xb4   : > { %1036 = vmatmul.mubr.msk.bf16.vlgmr.msra.gmra.mxu0 %vm359_vm2, %v984_v31  ;;  %v630_v34 = vsel %vm363_vm0, %v625_v33, 0 }
  0xb5   : > { %1046 = vmatpush3.bf16.msra.mxu0 %v571_v32  ;;  %1047 = vmatprep.mubr.msk.bf16.mxu0 %vm1229_vm1, %v1228_v9 }
  0xb6   : > { %1052 = vmatpush3.bf16.msra.mxu1 %v630_v34  ;;  %1057 = vmatprep.subr.bf16.mxu0 %v1228_v9 }
  0xb7   : > { %1063 = vmatprep.subr.bf16.mxu1 %v1228_v9 }
  0xb9   : > { %1054 = vmatmul.mubr.msk.bf16.vlgmr.msra.gmra.mxu1 %vm359_vm2, %v992_v36 }
  0xba   : > { %1064 = vmatpush3.bf16.msra.mxu1 %v731_v37  ;;  %1065 = vmatprep.mubr.msk.bf16.mxu1 %vm1229_vm1, %v1228_v9 }
  0xbc   : > { %1048 = vmatmul.mubr.msk.bf16.vlgmr.msra.gmra.mxu0 %vm359_vm2, %v990_v38  ;;  %v837_v21 = vpop.permute.xlu1 %836 }
  0xbd   : > { %1058 = vmatpush3.bf16.msra.mxu0 %v680_v39  ;;  %1059 = vmatprep.mubr.msk.bf16.mxu0 %vm1229_vm1, %v1228_v9 }
  0xbe   : > { %1069 = vmatprep.subr.bf16.mxu0 %v1228_v9 }
  0xc1   : > { %1066 = vmatmul.mubr.msk.bf16.vlgmr.msra.gmra.mxu1 %vm359_vm2, %v997_v40 }
  0xc4   : > { %1060 = vmatmul.mubr.msk.bf16.vlgmr.msra.gmra.mxu0 %vm359_vm2, %v994_v42 }
  0xc5   : > { %1070 = vmatpush3.bf16.msra.mxu0 %v790_v43  ;;  %1071 = vmatprep.mubr.msk.bf16.mxu0 %vm1229_vm1, %v1228_v9 }
  0xcc   : > { %1072 = vmatmul.mubr.msk.bf16.vlgmr.msra.gmra.mxu0 %vm359_vm2, %v999_v44 }
  0xfa   : > { %v447_v45 = vpop.f32.mrf.mxu1  ;;  %v401_v46 = vpop.f32.mrf.mxu0 }
  0xfb   : > { %v448_v48 = vadd.f32 %v447_v45, %v401_v46 }
  0xfc   : > { %v1031_v47 = vpop.f32.mrf.mxu1  ;;  %v1025_v49 = vpop.f32.mrf.mxu0 }
  0xfe   : > { %v450_v50 = vpop.f32.mrf.mxu1  ;;  %v404_v51 = vpop.f32.mrf.mxu0 }
 0x100   : > { %v1032_v52 = vpop.f32.mrf.mxu1  ;;  %v1026_v53 = vpop.f32.mrf.mxu0 }
 0x102   : > { %v556_v54 = vpop.f32.mrf.mxu1 }
 0x104   : > { %v1043_v55 = vpop.f32.mrf.mxu1 }
 0x106   : > { %v559_v56 = vpop.f32.mrf.mxu1 }
 0x108   : > { %v1044_v57 = vpop.f32.mrf.mxu1 }
 0x174   : > { %v505_v58 = vpop.f32.mrf.mxu0 }
 0x175   : > { %v511_v63 = vadd.f32 %v505_v58, %v448_v48 }
 0x176   : > { %v1037_v59 = vpop.f32.mrf.mxu0 }
 0x177   : > { %v562_v4 = vadd.f32 %v556_v54, %v511_v63 }
 0x178   : > { %v508_v60 = vpop.f32.mrf.mxu0 }
 0x179   : > { %v666_v61 = vpop.f32.mrf.mxu1 }
 0x17a   : > { %v1038_v62 = vpop.f32.mrf.mxu0 }
 0x17b   : > { %v1055_v0 = vpop.f32.mrf.mxu1 }
 0x17c   : > { %v607_v1 = vpop.f32.mrf.mxu0 }
 0x17d   : > { %v669_v2 = vpop.f32.mrf.mxu1  ;;  %v613_v7 = vadd.f32 %v607_v1, %v562_v4 }
 0x17e   : > { %v1049_v3 = vpop.f32.mrf.mxu0 }
 0x17f   : > { %v1056_v5 = vpop.f32.mrf.mxu1  ;;  %v672_v12 = vadd.f32 %v666_v61, %v613_v7 }
 0x180   : > { %v610_v6 = vpop.f32.mrf.mxu0 }
 0x181   : > { %v767_v8 = vpop.f32.mrf.mxu1 }
 0x182   : > { %v1050_v9 = vpop.f32.mrf.mxu0 }
 0x183   : > { %v1067_v10 = vpop.f32.mrf.mxu1 }
 0x184   : > { %v716_v11 = vpop.f32.mrf.mxu0 }
 0x185   : > { %v770_v13 = vpop.f32.mrf.mxu1  ;;  %v722_v15 = vadd.f32 %v716_v11, %v672_v12 }
 0x186   : > { %v1061_v14 = vpop.f32.mrf.mxu0 }
 0x187   : > { %v1068_v16 = vpop.f32.mrf.mxu1  ;;  %v773_v19 = vadd.f32 %v767_v8, %v722_v15 }
 0x188   : > { %v719_v17 = vpop.f32.mrf.mxu0 }
 0x18a   : > { %v1062_v18 = vpop.f32.mrf.mxu0 }
 0x18c   : > { %v826_v20 = vpop.f32.mrf.mxu0 }
 0x18d   : > { %v832_v22 = vadd.f32 %v826_v20, %v773_v19 }
 0x18e   : > { %v1073_v23 = vpop.f32.mrf.mxu0 }
 0x18f   : > { %v839_v24 = vadd.f32 %v837_v21, %v832_v22 }
 0x190   : > { %v829_v25 = vpop.f32.mrf.mxu0 }
 0x191   : > { %v841_v26 = vsel %vm840_vm3, %v839_v24, 0.0  ;;  %v846_v27 = vmul.f32 %v839_v24, %v839_v24 }
 0x192   : > { %v1074_v28 = vpop.f32.mrf.mxu0  ;;  %842 = vadd.xlane.f32.xlu0 %v841_v26 }
 0x193   : > { %v847_v29 = vsel %vm840_vm3, %v846_v27, 0.0 }
 0x194   : > { %848 = vadd.xlane.f32.xlu1 %v847_v29 }
 0x21b   : > { %v843_v30 = vpop.xlane.xlu0 %842 }
 0x21c   : > { %845 = vst.msk [vmem:[%s351_s13] sm:$0xf] %vm844_vm4, %v843_v30 }
 0x21d   : > { %v849_v31 = vpop.xlane.xlu1 %848 }
 0x21e   : > { %851 = vst.msk [vmem:[%s351_s13] sm:$0xf] %vm850_vm5, %v849_v31 }
 0x21f PF: > { %s14_s23 = sadd.s32 1, %s1225_s23   ;;  %s1493_s8 = sld [smem:[#allocation4_spill]] }
 0x220   : > { %p11_p1 = scmp.ge.s32.totalorder %s14_s23, 18   ;;  %s1494_s15 = smov %s1197_s16 }
 0x221   : > { %s1495_s16 = smov %s1339_s27  ;;  %s1496_s17 = smov %s1205_s18 }
 0x222   : > { %s1497_s18 = smov %s1336_s14  ;;  %s1498_s19 = smov %s1217_s21 }
 0x223   : > { %s1499_s20 = smov %s1221_s22  ;;  %s1501_s22 = smov %s1505_s25 }
 0x224   :  { %13 = sbr.rel (!%p11_p1) target bundleno = 5 (0x5), region = 166 }
 0x225   : > { %s1500_s21 = smov %s1493_s8 }

// kernel: res_conv_forward.9
= control target key start
LH: loop header
LB: loop body
LE: loop exit
PB: predicated region body
PF: predicated region fallthrough
CT: control target
= control target key end

     0   :  { %s470_s12 = smov 0   ;;  %s472_s13 = smov 0   ;;  %s537_s0 = inlined_call_operand.vmem [shape: f32[2,8,16,8], index: 0, kind: input, shape index: {}]   ;;  %s538_s1 = inlined_call_operand.vmem [shape: f32[16,1], index: 1, kind: input, shape index: {}]   ;;  %s539_s2 = inlined_call_operand.vmem [shape: f32[16,1], index: 2, kind: input, shape index: {}]   ;;  %s540_s3 = inlined_call_operand.vmem [shape: f32[2,8,16,8], index: 3, kind: output, shape index: {}]  }
   0x1   :  { %s474_s14 = smov 0   ;;  %s476_s15 = smov 0  }
   0x2   :  { %s478_s16 = smov 0  }
   0x3 LB: > { %s22_s17 = sadd.s32 1, %s439_s14  ;;  %s25_s18 = sadd.s32 1, %s443_s15  ;;  %s447_s16 = sphi %s478_s16, %s13_s16   ;;  %s443_s15 = sphi %s476_s15, %s544_s15   ;;  %s439_s14 = sphi %s474_s14, %s543_s14   ;;  %s435_s13 = sphi %s472_s13, %s542_s13   ;;  %s431_s12 = sphi %s470_s12, %s541_s12  }
   0x4   : > { %p23_p0 = scmp.ge.s32.totalorder %s22_s17, 8  ;;  %p351_p1 = scmp.ge.s32.totalorder %s447_s16, 1 }
   0x5   : > { %p157_p2 = scmp.lt.s32.totalorder %s447_s16, 17 }
   0x6   : > { %s546_s17 = smov (%p23_p0, %s22_s17), 0  ;;  %s548_s18 = smov (!%p23_p0, %s25_s18), %s443_s15 }
   0x7   : > { %p158_p3 = pnand %p351_p1, %p157_p2  ;;  %p27_p4 = scmp.ge.s32.totalorder %s548_s18, 2 }
   0x8   : > { %p189_p5 = scmp.lt.s32.totalorder (!%p158_p3), %s435_s13, 1  ;;  %p191_p6 = scmp.lt.s32.totalorder (!%p158_p3), %s431_s12, 7 }
   0x9   : > { %s550_s18 = smov (%p27_p4, %s548_s18), 0  ;;  %161 = sbr.rel (%p158_p3) target bundleno = 170 (0xaa), region = 32 }
   0xe   : > { %v223_v0 = vld [vmem:[%s539_s2] sm:$0xff]  ;;  %v449_v2 = vmov 0   ;;  %v224_v3 = vld [vmem:[%s539_s2 + $0x8] sm:$0xff]  ;;  %s552_s13 = smov (!%p189_p5, %s435_s13), 1  ;;  %s554_s12 = smov (!%p191_p6, %s431_s12), 7  ;;  %vm249_vm0 = vcmask 64512  }
   0xf   : > { %v209_v1 = vld [vmem:[%s538_s1] sm:$0xff]  ;;  %404 = vset.pattern.permute.xlu1 %v449_v2  ;;  %403 = vset.pattern.permute.xlu0 %v449_v2  ;;  %v210_v4 = vld [vmem:[%s538_s1 + $0x8] sm:$0xff]  ;;  %s352_s27 = sshll.u32 %s554_s12, 1  ;;  %s353_s28 = sshll.u32 %s552_s13, 4 }
  0x10   : > { %227 = vperm.xlu1 %404, %v223_v0   ;;  %213 = vperm.xlu0 %403, %v209_v1   ;;  %s195_s29 = sadd.s32 %s353_s28, %s352_s27 }
  0x11   : > { %s354_s30 = sshll.u32 %s195_s29, 3 }
  0x12   : > { %s197_s6 = scalar_lea.vmem %s537_s0, %s354_s30  ;;  %s206_s9 = scalar_lea.vmem %s540_s3, %s354_s30 }
  0x13   : > { %v207_v5 = vld [vmem:[%s197_s6] sm:$0xff]  ;;  %v208_v9 = vld [vmem:[%s197_s6 + $0x8] sm:$0xff] }
  0x14   : > { %232 = vperm.xlu1 %404, %v224_v3   ;;  %218 = vperm.xlu0 %403, %v210_v4  }
  0x8b   : > { %v228_v6 = vpop.permute.xlu1 %227  ;;  %v214_v7 = vpop.permute.xlu0 %213 }
  0x8c   : > { %v221_v8 = vmul.f32 %v214_v7, %v207_v5 }
  0x8e   : > { %v235_v10 = vadd.f32 %v228_v6, %v221_v8 }
  0x8f   : > { %v219_v11 = vpop.permute.xlu0 %218  ;;  %v233_v14 = vpop.permute.xlu1 %232 }
  0x90   : > { %v239_v12 = vmin.f32 %v235_v10, 0.0  ;;  %v222_v13 = vmul.f32 %v219_v11, %v208_v9  ;;  %vm237_vm1 = vcmp.gt.f32.partialorder %v235_v10, 0.0 }
  0x92   : > { %v241_v15 = vmul.f32 1.442695, %v239_v12  ;;  %v236_v16 = vadd.f32 %v233_v14, %v222_v13 }
  0x94   : > { %405 = vpow2.f32 %v241_v15  ;;  %v240_v17 = vmin.f32 %v236_v16, 0.0  ;;  %vm238_vm2 = vcmp.gt.f32.partialorder %v236_v16, 0.0 }
  0x96   : > { %v243_v18 = vmul.f32 1.442695, %v240_v17 }
  0x98   : > { %407 = vpow2.f32 %v243_v18 }
  0xa1   : > { %v406_v19 = vpop.eup %405 }
  0xa2   : > { %v358_v20 = vadd.f32 -1.0, %v406_v19 }
  0xa4   : > { %v247_v21 = vsel %vm237_vm1, %v235_v10, %v358_v20 }
  0xa5   : > { %v408_v22 = vpop.eup %407  ;;  %250 = vst.msk [vmem:[%s206_s9] sm:$0xff] %vm249_vm0, %v247_v21 }
  0xa6   : > { %v359_v23 = vadd.f32 -1.0, %v408_v22 }
  0xa8   : > { %v248_v24 = vsel %vm238_vm2, %v236_v16, %v359_v23 }
  0xa9   : > { %251 = vst.msk [vmem:[%s206_s9 + $0x8] sm:$0xff] %vm249_vm0, %v248_v24 }
  0xaa PF: > { %s13_s16 = sadd.s32 1, %s447_s16   ;;  %s541_s12 = smov %s439_s14 }
  0xab   : > { %p10_p7 = scmp.ge.s32.totalorder %s13_s16, 18   ;;  %s542_s13 = smov %s443_s15 }
  0xac   : > { %s543_s14 = smov %s546_s17  ;;  %s544_s15 = smov %s550_s18 }
  0xad   :  { %12 = sbr.rel (!%p10_p7) target bundleno = 3 (0x3), region = 62 }

// kernel: res_conv_forward.8
= control target key start
LH: loop header
LB: loop body
LE: loop exit
PB: predicated region body
PF: predicated region fallthrough
CT: control target
= control target key end

     0   :  { %s1988_s0 = inlined_call_operand.vmem [shape: bf16[8,9,4,9], index: 0, kind: input, shape index: {}, may-alias: {0,1}]   ;;  %s1989_s1 = inlined_call_operand.vmem [shape: bf16[8,9,4,9], index: 1, kind: input, shape index: {}, may-alias: {0,1}]   ;;  %s1990_s2 = inlined_call_operand.vmem [shape: bf16[2,8,4,8], index: 2, kind: input, shape index: {}]   ;;  %s1991_s3 = inlined_call_operand.vmem [shape: bf16[3,3,4,4], index: 3, kind: input, shape index: {}]   ;;  %s1992_s4 = inlined_call_operand.vmem [shape: f32[4,1], index: 4, kind: input, shape index: {}]   ;;  %s1993_s5 = inlined_call_operand.vmem [shape: f32[4,1], index: 5, kind: input, shape index: {}]   ;;  %s1994_s6 = inlined_call_operand.vmem [shape: f32[4,1], index: 6, kind: input, shape index: {}]   ;;  %s1995_s7 = inlined_call_operand.vmem [shape: bf16[16,8], index: 7, kind: input, shape index: {}]   ;;  %s1996_s8 = inlined_call_operand.vmem [shape: f32[16,1], index: 8, kind: input, shape index: {}]   ;;  %s1997_s9 = inlined_call_operand.vmem [shape: f32[2,8,16,8], index: 9, kind: output, shape index: {0}]   ;;  %s1998_s10 = inlined_call_operand.vmem [shape: f32[2,8,16,2], index: 10, kind: output, shape index: {1}]  }
   0x1   :  { %2001 = sst [smem:[#allocation6_spill]] %s1993_s5 }
   0x2   :  { %2002 = sst [smem:[#allocation7_spill]] %s1994_s6 }
   0x3   :  { %2003 = sst [smem:[#allocation8_spill]] %s1995_s7 }
   0x4   :  { %2004 = sst [smem:[#allocation9_spill]] %s1996_s8 }
   0x5   :  { %2005 = sst [smem:[#allocation10_spill]] %s1997_s9 }
   0x6   :  { %2006 = sst [smem:[#allocation11_spill]] %s1998_s10 }
   0x7   :  { %s1718_s13 = smov 0   ;;  %s1720_s14 = smov 0  }
   0x8   :  { %s1722_s15 = smov 0   ;;  %s1724_s16 = smov 0  }
   0x9   :  { %s1726_s17 = smov 0   ;;  %s1728_s18 = smov 0  }
   0xa   :  { %s1730_s19 = smov 0   ;;  %s1732_s20 = smov 0  }
   0xb   :  { %s1734_s21 = smov 0  }
   0xc LB: > { %s30_s22 = sadd.s32 1, %s1648_s19  ;;  %s33_s23 = sadd.s32 1, %s1652_s20  ;;  %s1656_s21 = sphi %s1734_s21, %s21_s21   ;;  %s1652_s20 = sphi %s1732_s20, %s2024_s20   ;;  %s1648_s19 = sphi %s1730_s19, %s2023_s19   ;;  %s1644_s18 = sphi %s1728_s18, %s2022_s18   ;;  %s1640_s17 = sphi %s1726_s17, %s2021_s17   ;;  %s1636_s16 = sphi %s1724_s16, %s2020_s16   ;;  %s1632_s15 = sphi %s1722_s15, %s2019_s15   ;;  %s1628_s14 = sphi %s1720_s14, %s2018_s14   ;;  %s1624_s13 = sphi %s1718_s13, %s2017_s13  }
   0xd   : > { %p31_p0 = scmp.ge.s32.totalorder %s30_s22, 8  ;;  %s42_s24 = sadd.s32 1, %s1636_s16 }
   0xe   : > { %p49_p1 = scmp.ne.s32.totalorder %s1636_s16, %s1632_s15  ;;  %p50_p2 = scmp.eq.s32.totalorder %s1656_s21, 0 }
   0xf   : > { %s1769_s25 = scalar_select %p31_p0, 0, %s30_s22  }
  0x10   : > { %s2026_s23 = smov (!%p31_p0, %s33_s23), %s1652_s20  ;;  %p1776_p3 = por %p50_p2, %p49_p1 }
  0x11   : > { %2007 = sst [smem:[#allocation5_spill]] %s1769_s25  ;;  %s38_s26 = ssub.s32 %s1648_s19, %s1769_s25 }
  0x12   : > { %p35_p4 = scmp.ge.s32.totalorder %s2026_s23, 2  ;;  %s1373_s28 = sshll.u32 %s1652_s20, 1 }
  0x13   : > { %s68_s29 = sadd.s32 1, %s1769_s25  ;;  %s74_s30 = sadd.s32 1, %s1628_s14 }
  0x14   : > { %s2028_s23 = smov (%p35_p4, %s2026_s23), 0  ;;  %s70_s11 = ssub.s32 %s30_s22, %s68_s29 }
  0x15   : > { %p81_p5 = scmp.ne.s32.totalorder %s1628_s14, %s1624_s13  ;;  %s37_s12 = ssub.s32 %s1652_s20, %s2028_s23 }
  0x16   : > { %s1374_s10 = sshll.u32 %s2028_s23, 1  ;;  %s39_s9 = sor.u32 %s38_s26, %s37_s12 }
  0x17   : > { %s69_s7 = ssub.s32 %s1373_s28, %s1374_s10  ;;  %p40_p6 = scmp.eq.s32.totalorder %s39_s9, 0 }
  0x18   : > { %s71_s8 = sor.u32 %s70_s11, %s69_s7  ;;  %p1792_p8 = por %p81_p5, %p50_p2 }
  0x19   : > { %p72_p7 = scmp.eq.s32.totalorder %s71_s8, 0  ;;  %p1376_p9 = scmp.ge.s32.totalorder %s1656_s21, 16 }
  0x1a   : > { %s1797_s25 = scalar_select %p40_p6, %s1636_s16, %s42_s24  }
  0x1b   : > { %s1800_s5 = scalar_select %p72_p7, %s1628_s14, %s74_s30  }
  0x1c   : > { %335 = sbr.rel (%p1376_p9) target bundleno = 50 (0x32), region = 40 }
  0x21   : > { %338 = sbr.rel (!%p1776_p3) target bundleno = 42 (0x2a), region = 44  ;;  %s340_s7 = sand.u32 (%p1776_p3), 1, %s1636_s16  }
  0x22   : > { %s1502_s8 = smul.u32 (%p1776_p3), 36, %s1652_s20  ;;  %s1377_s9 = sshll.u32 (%p1776_p3), %s340_s7, 3 }
  0x23   : > { %s342_s29 = scalar_lea.vmem (%p1776_p3), [#allocation3], %s1377_s9 }
  0x24   : > { %s345_s10 = sadd.s32 (%p1776_p3), %s1648_s19, %s1502_s8 }
  0x25   : > { %s1380_s22 = sshll.u32 (%p1776_p3), %s345_s10, 1 }
  0x26   : > { %s347_s24 = scalar_lea.vmem %s1988_s0, %s1380_s22 }
  0x27   : > { %v364_v0 = vld [vmem:[%s347_s24] sm:$0x3]  ;;  %v366_v1 = vld [vmem:[%s347_s24 + $0x12] sm:$0x3]  ;;  %v368_v2 = vld [vmem:[%s347_s24 + $0x24] sm:$0x3] }
  0x28   : > { %365 = vst [vmem:[%s342_s29] sm:$0x3] %v364_v0  ;;  %367 = vst [vmem:[%s342_s29 + $0x2] sm:$0x3] %v366_v1  ;;  %v370_v3 = vld [vmem:[%s347_s24 + $0x36] sm:$0x3] }
  0x29   : > { %369 = vst [vmem:[%s342_s29 + $0x4] sm:$0x3] %v368_v2  ;;  %371 = vst [vmem:[%s342_s29 + $0x6] sm:$0x3] %v370_v3 }
  0x2a PF: > { %403 = sbr.rel (!%p1792_p8) target bundleno = 50 (0x32), region = 85  ;;  %s405_s27 = sand.u32 (%p1792_p8), 1, %s1628_s14  }
  0x2b   : > { %s1246_s30 = smul.u32 (%p1792_p8), 36, %s1652_s20  ;;  %s1381_s11 = sshll.u32 (%p1792_p8), %s405_s27, 2 }
  0x2c   : > { %s407_s22 = scalar_lea.vmem (%p1792_p8), [#allocation4], %s1381_s11 }
  0x2d   : > { %s1247_s12 = sadd.s32 (%p1792_p8), %s1648_s19, %s1246_s30 }
  0x2e   : > { %s1382_s7 = sshll.u32 (%p1792_p8), %s1247_s12, 1 }
  0x2f   : > { %s1249_s9 = scalar_lea.vmem %s1989_s1, %s1382_s7 }
  0x30   : > { %v1383_v4 = vld [vmem:[%s1249_s9 + $0x2] sm:$0x3]  ;;  %v1384_v5 = vld [vmem:[%s1249_s9 + $0x14] sm:$0x3] }
  0x31   : > { %432 = vst [vmem:[%s407_s22] sm:$0x3] %v1383_v4  ;;  %434 = vst [vmem:[%s407_s22 + $0x2] sm:$0x3] %v1384_v5 }
  0x32 PF: > { %p1385_p10 = scmp.ge.s32.totalorder %s1656_s21, 1  ;;  %p464_p11 = scmp.lt.s32.totalorder %s1656_s21, 17 }
  0x34   : > { %p465_p12 = pnand %p1385_p10, %p464_p11 }
  0x35   : > { %s471_s6 = sand.u32 (!%p465_p12), 1, %s1632_s15   ;;  %p544_p13 = scmp.lt.s32.totalorder (!%p465_p12), %s1644_s18, 1 }
  0x36   : > { %468 = sbr.rel (%p465_p12) target bundleno = 790 (0x316), region = 123  ;;  %s1386_s26 = sshll.u32 (!%p465_p12), %s471_s6, 3 }
  0x37   : > { %p546_p0 = scmp.lt.s32.totalorder (!%p465_p12), %s1640_s17, 7  ;;  %s1835_s15 = scalar_lea.vmem (!%p465_p12), [#allocation3], %s1386_s26 }
  0x38   : > { %s478_s24 = sand.u32 (!%p465_p12), 1, %s1624_s13   ;;  %s1661_s6 = smov (!%p465_p12), 127  }
  0x39   : > { %s1853_s11 = sshll.u32 (!%p465_p12), %s478_s24, 2  ;;  %s2010_s12 = sld [smem:[#allocation6_spill]] (!%p465_p12) }
  0x3a   : > { %s480_s22 = scalar_lea.vmem (!%p465_p12), [#allocation4], %s1853_s11  ;;  %s2011_s8 = sld [smem:[#allocation7_spill]] (!%p465_p12) }
  0x3b   : > { %v677_v6 = vlaneseq  ;;  %v1658_v7 = vmov 1983009808   ;;  %v1659_v9 = vmov 0.0   ;;  %vm581_vm0 = vcmask 1041408   ;;  %s2030_s18 = smov (!%p544_p13, %s1644_s18), 1  ;;  %s2032_s17 = smov (!%p546_p0, %s1640_s17), 7 }
  0x3c   : > { %v675_v8 = vunpack.c.l.s4 %v1658_v7  ;;  %1442 = vmatprep.subr.bf16.mxu0 %v1659_v9  ;;  %1448 = vmatprep.subr.bf16.mxu1 %v1659_v9  ;;  %vm1660_vm1 = vmmov 0   ;;  %v571_v11 = vld [vmem:[%s1835_s15] sm:$0x3]  ;;  %v1396_v13 = vld [vmem:[%s1835_s15 + $0x2] sm:$0x3]  ;;  %s1388_s28 = sshll.u32 %s2030_s18, 3 }
  0x3d   : > { %v678_v10 = vshrl.u32 %v677_v6, 7  ;;  %1444 = vmatprep.mubr.msk.bf16.mxu0 %vm1660_vm1, %v1659_v9  ;;  %1450 = vmatprep.mubr.msk.bf16.mxu1 %vm1660_vm1, %v1659_v9  ;;  %v629_v14 = vsel %vm581_vm0, %v571_v11, 0  ;;  %v583_v16 = vsel %vm581_vm0, %v1396_v13, 0  ;;  %v572_v17 = vld [vmem:[%s1991_s3] sm:$0x3]  ;;  %s549_s30 = sadd.s32 %s1388_s28, %s2032_s17  ;;  %vm577_vm2 = vcmask 31744  }
  0x3e   : > { %v676_v12 = vunpack.c.0.s8 %v675_v8  ;;  %1449 = vmatpush3.bf16.msra.mxu1 %v629_v14  ;;  %v1402_v18 = vld [vmem:[%s1835_s15 + $0x4] sm:$0x3]  ;;  %1443 = vmatpush3.bf16.msra.mxu0 %v583_v16  ;;  %v1397_v19 = vld [vmem:[%s1991_s3 + $0x2] sm:$0x3]  ;;  %s1389_s13 = sshll.u32 %s549_s30, 1  ;;  %vm1092_vm3 = vcmask 60418  }
  0x3f   : > { %1460 = vmatprep.subr.bf16.mxu1 %v1659_v9  ;;  %1454 = vmatprep.subr.bf16.mxu0 %v1659_v9  ;;  %v738_v21 = vsel %vm581_vm0, %v1402_v18, 0  ;;  %s551_s9 = scalar_lea.vmem %s1990_s2, %s1389_s13  ;;  %v891_v22 = vld [vmem:[%s480_s22] sm:$0x3]  ;;  %v1403_v27 = vld [vmem:[%s1991_s3 + $0x6] sm:$0x3]  ;;  %v1662_v29 = vmov 0  }
  0x40   : > { %v679_v15 = vsub.s32 %v676_v12, %v678_v10  ;;  %v1582_v23 = vld [vmem:[%s551_s9] ss:$0 sps:$4 sm:$0x33]   ;;  %1580 = vset.pattern.permute.xlu1 %v1662_v29  ;;  %1581 = vset.pattern.permute.xlu0 %v1662_v29  ;;  %v1405_v35 = vld [vmem:[%s1835_s15 + $0x6] sm:$0x3]  ;;  %v898_v45 = vsel %vm581_vm0, %v891_v22, 0 }
  0x41   : > { %1451 = vmatmul.mubr.msk.bf16.vlgmr.msra.gmra.mxu1 %vm577_vm2, %v572_v17  ;;  %1445 = vmatmul.mubr.msk.bf16.vlgmr.msra.gmra.mxu0 %vm577_vm2, %v1397_v19  ;;  %v1051_v28 = vld [vmem:[%s1992_s4] sm:$0xf]  ;;  %v1400_v37 = vld [vmem:[%s1991_s3 + $0x4] sm:$0x3]  ;;  %v789_v38 = vsel %vm581_vm0, %v1405_v35, 0  ;;  %vm1079_vm5 = vcmask 58368  }
  0x42   : > { %v680_v20 = vrot.slane %v571_v11, %v679_v15  ;;  %v841_v24 = vrot.slane %v1402_v18, %v679_v15  ;;  %v1001_v25 = vrot.slane %v891_v22, %v679_v15  ;;  %1461 = vmatpush3.bf16.msra.mxu1 %v738_v21  ;;  %1456 = vmatprep.mubr.msk.bf16.mxu0 %vm1660_vm1, %v1659_v9  ;;  %v1058_v30 = vld [vmem:[%s2010_s12] sm:$0xf]  ;;  %v1412_v40 = vld [vmem:[%s480_s22 + $0x2] sm:$0x3]  ;;  %v1408_v42 = vld [vmem:[%s1991_s3 + $0xa] sm:$0x3] }
  0x43   : > { %v1090_v26 = vrot.slane %v1582_v23, %v679_v15  ;;  %1462 = vmatprep.mubr.msk.bf16.mxu1 %vm1660_vm1, %v1659_v9  ;;  %1472 = vmatprep.subr.bf16.mxu1 %v1659_v9  ;;  %v1065_v31 = vld [vmem:[%s2011_s8] sm:$0xf]  ;;  %v949_v43 = vsel %vm581_vm0, %v1412_v40, 0  ;;  %v1406_v44 = vld [vmem:[%s1991_s3 + $0x8] sm:$0x3]  ;;  %vm1118_vm6 = vcmask 1043456  }
  0x44   : > { %681 = vrot.lane.b32.xlu0 %v680_v20, %s1661_s6  ;;  %1002 = vrot.lane.b32.xlu1 %v1001_v25, %s1661_s6  ;;  %v1413_v46 = vld [vmem:[%s1991_s3 + $0xe] sm:$0x3]  ;;  %v1410_v48 = vld [vmem:[%s1991_s3 + $0xc] sm:$0x3]  ;;  %s2013_s28 = sld [smem:[#allocation8_spill]]  ;;  %vm1114_vm7 = vcmask 64512  }
  0x45   : > { %1093 = vst.msk [vmem:[#allocation2] sm:$0xc] %vm1092_vm3, %v1090_v26  ;;  %v1415_v50 = vld [vmem:[%s1991_s3 + $0x10] sm:$0x3]  ;;  %s1390_s24 = sshll.u32 %s2032_s17, 1  ;;  %s1391_s29 = sshll.u32 %s2030_s18, 4 }
  0x46   : > { %s558_s15 = sadd.s32 %s1391_s29, %s1390_s24  ;;  %s2014_s30 = sld [smem:[#allocation10_spill]]  ;;  %vm1171_vm8 = vcmask 7168   ;;  %vm1182_vm9 = vcmask 15368  }
  0x47   : > { %s1392_s27 = sshll.u32 %s558_s15, 3  ;;  %s2015_s7 = sld [smem:[#allocation11_spill]] }
  0x48   : > { %842 = vrot.lane.b32.xlu0 %v841_v24, %s1661_s6  ;;  %1054 = vperm.xlu1 %1580, %v1051_v28   ;;  %s2012_s6 = sld [smem:[#allocation9_spill]] }
  0x49   : > { %1463 = vmatmul.mubr.msk.bf16.vlgmr.msra.gmra.mxu1 %vm577_vm2, %v1403_v27 }
  0x4a   : > { %1474 = vmatprep.mubr.msk.bf16.mxu1 %vm1660_vm1, %v1659_v9 }
  0x4c   : > { %1061 = vperm.xlu0 %1581, %v1058_v30   ;;  %1068 = vperm.xlu1 %1580, %v1065_v31   ;;  %s560_s12 = scalar_lea.vmem %s2014_s30, %s1392_s27 }
  0x4d   : > { %s569_s13 = scalar_lea.vmem %s2015_s7, %s1392_s27 }
  0x4e   : > { %v1098_v32 = vld [vmem:[%s2012_s6 + $0x8] sm:$0xff]  ;;  %v1097_v33 = vld [vmem:[%s2012_s6] sm:$0xff] }
  0x50   : > { %1106 = vperm.xlu0 %1581, %v1098_v32   ;;  %1101 = vperm.xlu1 %1580, %v1097_v33  }
  0xb6   : > { %v682_v34 = vpop.permute.xlu0 %681  ;;  %v1003_v47 = vpop.permute.xlu1 %1002 }
  0xb7   : > { %v687_v36 = vsel %vm581_vm0, %v682_v34, 0  ;;  %v1008_v49 = vsel %vm581_vm0, %v1003_v47, 0 }
  0xb8   : > { %1455 = vmatpush3.bf16.msra.mxu0 %v687_v36 }
  0xb9   : > { %1466 = vmatprep.subr.bf16.mxu0 %v1659_v9 }
  0xba   : > { %v843_v39 = vpop.permute.xlu0 %842 }
  0xbb   : > { %1457 = vmatmul.mubr.msk.bf16.vlgmr.msra.gmra.mxu0 %vm577_vm2, %v1400_v37  ;;  %v848_v41 = vsel %vm581_vm0, %v843_v39, 0 }
  0xbc   : > { %1467 = vmatpush3.bf16.msra.mxu0 %v789_v38  ;;  %1473 = vmatpush3.bf16.msra.mxu1 %v848_v41 }
  0xbd   : > { %1468 = vmatprep.mubr.msk.bf16.mxu0 %vm1660_vm1, %v1659_v9  ;;  %1478 = vmatprep.subr.bf16.mxu0 %v1659_v9 }
  0xbe   : > { %1484 = vmatprep.subr.bf16.mxu1 %v1659_v9 }
  0xbf   : > { %1475 = vmatmul.mubr.msk.bf16.vlgmr.msra.gmra.mxu1 %vm577_vm2, %v1408_v42 }
  0xc0   : > { %1485 = vmatpush3.bf16.msra.mxu1 %v949_v43  ;;  %1486 = vmatprep.mubr.msk.bf16.mxu1 %vm1660_vm1, %v1659_v9 }
  0xc1   : > { %1496 = vmatprep.subr.bf16.mxu1 %v1659_v9 }
  0xc3   : > { %1469 = vmatmul.mubr.msk.bf16.vlgmr.msra.gmra.mxu0 %vm577_vm2, %v1406_v44  ;;  %v1055_v26 = vpop.permute.xlu1 %1054 }
  0xc4   : > { %1479 = vmatpush3.bf16.msra.mxu0 %v898_v45  ;;  %1480 = vmatprep.mubr.msk.bf16.mxu0 %vm1660_vm1, %v1659_v9  ;;  %v1583_v45 = vld [vmem:[%s2013_s28] sm:$0xff]  }
  0xc5   : > { %1490 = vmatprep.subr.bf16.mxu0 %v1659_v9 }
  0xc7   : > { %1487 = vmatmul.mubr.msk.bf16.vlgmr.msra.gmra.mxu1 %vm577_vm2, %v1413_v46  ;;  %v1062_v31 = vpop.permute.xlu0 %1061  ;;  %v1069_v34 = vpop.permute.xlu1 %1068 }
  0xc8   : > { %1498 = vmatprep.mubr.msk.bf16.mxu1 %vm1660_vm1, %v1659_v9 }
  0xcb   : > { %1481 = vmatmul.mubr.msk.bf16.vlgmr.msra.gmra.mxu0 %vm577_vm2, %v1410_v48  ;;  %v1102_v46 = vpop.permute.xlu1 %1101 }
  0xcc   : > { %1491 = vmatpush3.bf16.msra.mxu0 %v1008_v49  ;;  %1492 = vmatprep.mubr.msk.bf16.mxu0 %vm1660_vm1, %v1659_v9 }
  0xd3   : > { %1493 = vmatmul.mubr.msk.bf16.vlgmr.msra.gmra.mxu0 %vm577_vm2, %v1415_v50 }
 0x101   : > { %v665_v51 = vpop.f32.mrf.mxu1  ;;  %v619_v52 = vpop.f32.mrf.mxu0 }
 0x102   : > { %v666_v53 = vadd.f32 %v665_v51, %v619_v52  ;;  %v1107_v51 = vpop.permute.xlu0 %1106 }
 0x103   : > { %v1452_v54 = vpop.f32.mrf.mxu1  ;;  %v1446_v55 = vpop.f32.mrf.mxu0 }
 0x105   : > { %v668_v56 = vpop.f32.mrf.mxu1  ;;  %v622_v57 = vpop.f32.mrf.mxu0 }
 0x107   : > { %v1453_v58 = vpop.f32.mrf.mxu1  ;;  %v1447_v59 = vpop.f32.mrf.mxu0 }
 0x109   : > { %v774_v60 = vpop.f32.mrf.mxu1 }
 0x10b   : > { %v1464_v61 = vpop.f32.mrf.mxu1 }
 0x10d   : > { %v777_v62 = vpop.f32.mrf.mxu1 }
 0x10f   : > { %v1465_v63 = vpop.f32.mrf.mxu1 }
 0x17b   : > { %v723_v0 = vpop.f32.mrf.mxu0 }
 0x17c   : > { %v729_v6 = vadd.f32 %v723_v0, %v666_v53 }
 0x17d   : > { %v1458_v1 = vpop.f32.mrf.mxu0 }
 0x17e   : > { %v780_v11 = vadd.f32 %v774_v60, %v729_v6 }
 0x17f   : > { %v726_v2 = vpop.f32.mrf.mxu0  ;;  %v884_v3 = vpop.f32.mrf.mxu1 }
 0x181   : > { %v1459_v4 = vpop.f32.mrf.mxu0  ;;  %v1476_v5 = vpop.f32.mrf.mxu1 }
 0x183   : > { %v825_v7 = vpop.f32.mrf.mxu0  ;;  %v887_v8 = vpop.f32.mrf.mxu1 }
 0x184   : > { %v831_v14 = vadd.f32 %v825_v7, %v780_v11 }
 0x185   : > { %v1470_v9 = vpop.f32.mrf.mxu0  ;;  %v1477_v10 = vpop.f32.mrf.mxu1 }
 0x186   : > { %v890_v19 = vadd.f32 %v884_v3, %v831_v14 }
 0x187   : > { %v828_v12 = vpop.f32.mrf.mxu0  ;;  %v985_v13 = vpop.f32.mrf.mxu1 }
 0x189   : > { %v1471_v15 = vpop.f32.mrf.mxu0  ;;  %v1488_v16 = vpop.f32.mrf.mxu1 }
 0x18b   : > { %v934_v17 = vpop.f32.mrf.mxu0  ;;  %v988_v18 = vpop.f32.mrf.mxu1 }
 0x18c   : > { %v940_v22 = vadd.f32 %v934_v17, %v890_v19 }
 0x18d   : > { %v1482_v20 = vpop.f32.mrf.mxu0  ;;  %v1489_v21 = vpop.f32.mrf.mxu1 }
 0x18e   : > { %v991_v25 = vadd.f32 %v985_v13, %v940_v22 }
 0x18f   : > { %v937_v23 = vpop.f32.mrf.mxu0 }
 0x191   : > { %v1483_v24 = vpop.f32.mrf.mxu0 }
 0x193   : > { %v1044_v27 = vpop.f32.mrf.mxu0 }
 0x194   : > { %v1050_v28 = vadd.f32 %v1044_v27, %v991_v25 }
 0x195   : > { %v1494_v29 = vpop.f32.mrf.mxu0 }
 0x196   : > { %v1057_v30 = vadd.f32 %v1055_v26, %v1050_v28 }
 0x197   : > { %v1047_v32 = vpop.f32.mrf.mxu0 }
 0x198   : > { %v1064_v33 = vmul.f32 %v1062_v31, %v1057_v30 }
 0x199   : > { %v1495_v35 = vpop.f32.mrf.mxu0 }
 0x19a   : > { %v1071_v36 = vadd.f32 %v1069_v34, %v1064_v33 }
 0x19c   : > { %v1073_v37 = vmin.f32 %v1071_v36, 0.0  ;;  %vm1072_vm4 = vcmp.gt.f32.partialorder %v1071_v36, 0.0 }
 0x19e   : > { %v1074_v38 = vmul.f32 1.442695, %v1073_v37 }
 0x1a0   : > { %1584 = vpow2.f32 %v1074_v38 }
 0x1ad   : > { %v1585_v39 = vpop.eup %1584 }
 0x1ae   : > { %v1417_v40 = vadd.f32 -1.0, %v1585_v39 }
 0x1b0   : > { %v1077_v41 = vsel %vm1072_vm4, %v1071_v36, %v1417_v40 }
 0x1b1   : > { %v1078_v42 = vpack.c.bf16 %v1077_v41, %v1077_v41 }
 0x1b3   : > { %1080 = vst.msk [vmem:[#allocation2] sm:$0x3] %vm1079_vm5, %v1078_v42 }
 0x1ba   : > { %v1096_v43 = vld [vmem:[#allocation2] sm:$0xf] }
 0x1bb   : > { %v1120_v44 = vsel %vm1118_vm6, %v1096_v43, 0 }
 0x1bc   : > { %1497 = vmatpush3.bf16.msra.mxu1 %v1120_v44 }
 0x1bf   : > { %1499 = vmatmul.mubr.msk.bf16.vlgmr.msra.gmra.mxu1 %vm1114_vm7, %v1583_v45 }
 0x27f   : > { %v1156_v47 = vpop.f32.mrf.mxu1 }
 0x280   : > { %v1157_v48 = vadd.f32 %v1156_v47, %v1102_v46 }
 0x281   : > { %v1500_v49 = vpop.f32.mrf.mxu1 }
 0x282   : > { %1163 = vst.msk [vmem:[%s560_s12] sm:$0xff] %vm1114_vm7, %v1157_v48  ;;  %v1165_v50 = vsel %vm1114_vm7, %v1157_v48, 0.0  ;;  %v1174_v57 = vmul.f32 %v1157_v48, %v1157_v48 }
 0x283   : > { %1166 = vadd.xlane.f32.xlu1 %v1165_v50  ;;  %v1159_v52 = vpop.f32.mrf.mxu1 }
 0x284   : > { %v1160_v53 = vadd.f32 %v1159_v52, %v1107_v51  ;;  %v1176_v59 = vsel %vm1114_vm7, %v1174_v57, 0.0 }
 0x285   : > { %v1501_v54 = vpop.f32.mrf.mxu1 }
 0x286   : > { %1164 = vst.msk [vmem:[%s560_s12 + $0x8] sm:$0xff] %vm1114_vm7, %v1160_v53  ;;  %v1168_v55 = vsel %vm1114_vm7, %v1160_v53, 0.0  ;;  %v1175_v56 = vmul.f32 %v1160_v53, %v1160_v53 }
 0x287   : > { %1169 = vadd.xlane.f32.xlu0 %v1168_v55 }
 0x288   : > { %v1179_v58 = vsel %vm1114_vm7, %v1175_v56, 0.0 }
 0x289   : > { %1180 = vadd.xlane.f32.xlu1 %v1179_v58 }
 0x28b   : > { %1177 = vadd.xlane.f32.xlu0 %v1176_v59 }
 0x30c   : > { %v1167_v60 = vpop.xlane.xlu1 %1166 }
 0x30d   : > { %1172 = vst.msk [vmem:[%s569_s13] sm:$0xff] %vm1171_vm8, %v1167_v60 }
 0x310   : > { %v1170_v61 = vpop.xlane.xlu0 %1169 }
 0x311   : > { %1173 = vst.msk [vmem:[%s569_s13 + $0x8] sm:$0xff] %vm1171_vm8, %v1170_v61 }
 0x312   : > { %v1181_v62 = vpop.xlane.xlu1 %1180 }
 0x313   : > { %1184 = vst.msk [vmem:[%s569_s13 + $0x8] sm:$0xff] %vm1182_vm9, %v1181_v62 }
 0x314   : > { %v1178_v63 = vpop.xlane.xlu0 %1177 }
 0x315   : > { %1183 = vst.msk [vmem:[%s569_s13] sm:$0xff] %vm1182_vm9, %v1178_v63 }
 0x316 PF: > { %s21_s21 = sadd.s32 1, %s1656_s21   ;;  %s2016_s8 = sld [smem:[#allocation5_spill]] }
 0x317   : > { %p18_p1 = scmp.ge.s32.totalorder %s21_s21, 18   ;;  %s2017_s13 = smov %s1628_s14 }
 0x318   : > { %s2018_s14 = smov %s1800_s5  ;;  %s2019_s15 = smov %s1636_s16 }
 0x319   : > { %s2020_s16 = smov %s1797_s25  ;;  %s2021_s17 = smov %s1648_s19 }
 0x31a   : > { %s2022_s18 = smov %s1652_s20  ;;  %s2024_s20 = smov %s2028_s23 }
 0x31b   :  { %20 = sbr.rel (!%p18_p1) target bundleno = 12 (0xc), region = 201 }
 0x31c   : > { %s2023_s19 = smov %s2016_s8 }

</bundles_post_ra>
